<compile_context>
chip_gen: v7x
topology: tpu7x:2x2x1
jax: 0.10.0
libtpu: 0.0.40
codegen_flags: <defaults>
</compile_context>

<pallas_src>
import math

import jax
import jax.numpy as jnp
from jax.experimental import pallas as pl
from jax.experimental.pallas import tpu as pltpu

# ------------------------- model hyper-parameters --------------------------
IN_CHANNELS = 3
MULTIRES = 6                                          # frequency encoding levels
FREQ_DIM = IN_CHANNELS * 2 * MULTIRES                 # 36
ENC_DIM = IN_CHANNELS + FREQ_DIM                      # 39
ENC_PAD = 40                                          # 39 padded to a multiple of 8
MLP_LAYERS_DIMS = [32, 32]                            # hidden layer widths
GEOM_FEAT_SIZE = 32
OUT_DIM = 1 + GEOM_FEAT_SIZE                          # 33
BB_SIDES = 2.0

LANE = 128                                            # TPU lane width
MAX_TILE_N = 2048                                     # points per grid step (sweepable)


def _round_up(x, m):
    return ((x + m - 1) // m) * m


def _pick_tile(n):
    """Largest tile <= MAX_TILE_N that still yields >= 2 grid steps (v7x)."""
    half = _round_up(-(-n // 2), LANE)
    return max(LANE, min(MAX_TILE_N, half))


# ------------------------------- kernel ------------------------------------
def sdf_kernel(x_ref, scale_ref, phase_ref,
               w0_ref, b0_ref, w1_ref, b1_ref, w2_ref, b2_ref,
               out_ref, enc_ref):
    # Feature-major: x_ref [3, T], out_ref [33, T], enc_ref [40, T] scratch.
    t = x_ref.shape[1]

    # Identity rows (raw x; bbinv is folded into w0's identity columns) + pad.
    enc_ref[FREQ_DIM:ENC_DIM, :] = x_ref[...]
    enc_ref[ENC_DIM:ENC_PAD, :] = jnp.zeros((ENC_PAD - ENC_DIM, t), jnp.float32)

    # Frequency rows, channel-major (12 rows per input channel):
    #   enc[12c + 2g + s] = sin(x_c * (bbinv_c * 2^g * pi) + s * pi/2)
    # (cos folded in via the +pi/2 phase).  The x replication is just a
    # [1,T] -> [12,T] sublane broadcast — no lane tiling / concatenation.
    for c in range(IN_CHANNELS):
        r0 = c * 2 * MULTIRES
        xc = x_ref[c:c + 1, :]                              # [1, T]
        sc = scale_ref[r0:r0 + 2 * MULTIRES, :]             # [12, 1]
        ph = phase_ref[r0:r0 + 2 * MULTIRES, :]             # [12, 1]
        enc_ref[r0:r0 + 2 * MULTIRES, :] = jnp.sin(xc * sc + ph)   # f32 args

    enc = enc_ref[...].astype(jnp.bfloat16)                 # [40, T]

    # Single merged layer-0 matmul (identity + frequency parts together).
    h = jnp.dot(w0_ref[...], enc,
                preferred_element_type=jnp.float32) + b0_ref[...]
    h = jnp.maximum(h, 0.0)

    h = jnp.dot(w1_ref[...], h.astype(jnp.bfloat16),
                preferred_element_type=jnp.float32) + b1_ref[...]
    h = jnp.maximum(h, 0.0)

    # Last layer kept in f32; lane-dense [33, T] store (row 0 = sdf).
    out_ref[...] = jnp.dot(w2_ref[...], h,
                           preferred_element_type=jnp.float32) + b2_ref[...]


# ------------------------------- wrapper ------------------------------------
@jax.jit
def sdf_forward(points, bb_sides, params):
    """points: [N, IN_CHANNELS] float32.  Returns (sdf [N,1], geom [N,GEOM])."""
    n = points.shape[0]
    tile = _pick_tile(n)
    n_pad = _round_up(n, tile)

    # Feature-major points: [3, N_pad].
    points_t = jnp.pad(points.astype(jnp.float32).T, ((0, 0), (0, n_pad - n)))

    w0, b0, w1, b1, w2, b2 = params
    bbinv = (2.0 / bb_sides).astype(jnp.float32)                        # [3]

    # Encoding constants in the kernel's channel-major row order.
    freqs = (2.0 ** jnp.arange(MULTIRES, dtype=jnp.float32)) * math.pi   # [6]
    scale_cm = jnp.broadcast_to(
        bbinv[:, None, None] * freqs[None, :, None],
        (IN_CHANNELS, MULTIRES, 2)).reshape(FREQ_DIM, 1)                 # [36,1]
    phase_cm = jnp.broadcast_to(
        jnp.array([0.0, math.pi / 2.0], jnp.float32)[None, None, :],
        (IN_CHANNELS, MULTIRES, 2)).reshape(FREQ_DIM, 1)                 # [36,1]

    # w0 rows permuted to the kernel enc layout:
    #   kernel row 12c+2g+s  <-  original enc column 3 + 6g + 3s + c
    #   kernel rows 36..38   <-  identity columns (bbinv folded in), row 39 = 0
    trig_perm = jnp.array(
        [IN_CHANNELS + 6 * g + 3 * s + c
         for c in range(IN_CHANNELS)
         for g in range(MULTIRES)
         for s in range(2)], dtype=jnp.int32)
    w0_trig = w0[trig_perm, :]                                           # [36,32]
    w0_id = w0[:IN_CHANNELS, :] * bbinv[:, None]                         # [3, 32]
    w0_k = jnp.concatenate(
        [w0_trig, w0_id,
         jnp.zeros((ENC_PAD - ENC_DIM, MLP_LAYERS_DIMS[0]), jnp.float32)],
        axis=0)                                                          # [40,32]

    # Transposed (feature-major) weights; hidden layers pre-cast to bf16.
    w0_t = w0_k.T.astype(jnp.bfloat16)                                   # [32,40]
    w1_t = w1.T.astype(jnp.bfloat16)                                     # [32,32]
    w2_t = w2.T                                                          # [33,32] f32
    b0_c = b0.reshape(-1, 1)                                             # [32,1]
    b1_c = b1.reshape(-1, 1)                                             # [32,1]
    b2_c = b2.reshape(-1, 1)                                             # [33,1]

    grid = (n_pad // tile,)

    def _full(arr):
        return pl.BlockSpec(arr.shape, lambda i: (0, 0))

    out = pl.pallas_call(
        sdf_kernel,
        out_shape=jax.ShapeDtypeStruct((OUT_DIM, n_pad), jnp.float32),
        grid_spec=pltpu.PrefetchScalarGridSpec(
            num_scalar_prefetch=0,
            grid=grid,
            in_specs=[
                pl.BlockSpec((IN_CHANNELS, tile), lambda i: (0, i)),
                _full(scale_cm), _full(phase_cm),
                _full(w0_t), _full(b0_c),
                _full(w1_t), _full(b1_c),
                _full(w2_t), _full(b2_c),
            ],
            out_specs=pl.BlockSpec((OUT_DIM, tile), lambda i: (0, i)),
            scratch_shapes=[pltpu.VMEM((ENC_PAD, tile), jnp.float32)],
        ),
        compiler_params=pltpu.CompilerParams(
            dimension_semantics=("parallel",)),
    )(points_t, scale_cm, phase_cm, w0_t, b0_c, w1_t, b1_c, w2_t, b2_c)

    sdf = out[0:1, :n].T                                                 # [N, 1]
    geom = out[1:OUT_DIM, :n].T                                          # [N, 32]
    return sdf, geom


def init_params(key):
    """Deterministic synthetic parameters with the shapes implied by __init__."""
    dims = [ENC_DIM] + MLP_LAYERS_DIMS + [OUT_DIM]
    params = []
    for li, (din, dout) in enumerate(zip(dims[:-1], dims[1:])):
        key, kw = jax.random.split(key)
        scale = 1.0 / math.sqrt(din)
        w = jax.random.uniform(kw, (din, dout), jnp.float32, -scale, scale)
        b = jnp.full((1, dout), 0.01 * (li + 1), jnp.float32)
        params += [w, b]
    return tuple(params)


def reference_forward(points, bb_sides, params):
    """Pure-JAX reference of the original (un-folded, f32) math."""
    xn = points * (2.0 / bb_sides).reshape(1, -1)
    feats = [xn]
    for k in range(MULTIRES):
        freq = (2.0 ** k) * math.pi
        feats += [jnp.sin(freq * xn), jnp.cos(freq * xn)]
    enc = jnp.concatenate(feats, axis=-1)
    w0, b0, w1, b1, w2, b2 = params
    h = jnp.maximum(enc @ w0 + b0, 0.0)
    h = jnp.maximum(h @ w1 + b1, 0.0)
    out = h @ w2 + b2
    return out[:, 0:1], out[:, 1:]


if __name__ == "__main__":
    key = jax.random.PRNGKey(0)
    key, kp = jax.random.split(key)

    n_points = 200
    points = jax.random.uniform(kp, (n_points, IN_CHANNELS), jnp.float32,
                                -1.0, 1.0)
    bb_sides = jnp.full((IN_CHANNELS,), BB_SIDES, jnp.float32)
    params = init_params(jax.random.PRNGKey(42))

    sdf, geom = sdf_forward(points, bb_sides, params)
    jax.block_until_ready((sdf, geom))

    sdf_ref, geom_ref = reference_forward(points, bb_sides, params)
    assert sdf.shape == (n_points, 1)
    assert geom.shape == (n_points, GEOM_FEAT_SIZE)
    # bf16 hidden-layer operands (f32 accumulation, f32 last layer) -> relaxed
    # tolerance vs the pure-f32 reference.
    assert jnp.allclose(sdf, sdf_ref, atol=2e-2, rtol=2e-2)
    assert jnp.allclose(geom, geom_ref, atol=2e-2, rtol=2e-2)

    print("KERNEL_OK")
</pallas_src>

<mosaic_0001>
module attributes {stable_mosaic.version = 11 : i64} {
  func.func @sdf_kernel(%arg0: i32, %arg1: memref<3x128xf32, #tpu.memory_space<vmem>>, %arg2: memref<36x1xf32, #tpu.memory_space<vmem>>, %arg3: memref<36x1xf32, #tpu.memory_space<vmem>>, %arg4: memref<32x40xbf16, #tpu.memory_space<vmem>>, %arg5: memref<32x1xf32, #tpu.memory_space<vmem>>, %arg6: memref<32x32xbf16, #tpu.memory_space<vmem>>, %arg7: memref<32x1xf32, #tpu.memory_space<vmem>>, %arg8: memref<33x32xf32, #tpu.memory_space<vmem>>, %arg9: memref<33x1xf32, #tpu.memory_space<vmem>>, %arg10: memref<33x128xf32, #tpu.memory_space<vmem>>, %arg11: memref<40x128xf32, #tpu.memory_space<vmem>>) attributes {dimension_semantics = [#tpu.dimension_semantics<parallel>], iteration_bounds = array<i64: 2>, scalar_prefetch = 0 : i64, scratch_operands = 1 : i64, tpu.core_type = #tpu.core_type<tc>, window_params = [{transform_indices = @transform_0, window_bounds = array<i64: 3, 128>}, {pipeline_mode = #tpu.pipeline_mode<synchronous>, transform_indices = @transform_1, window_bounds = array<i64: 36, 1>}, {pipeline_mode = #tpu.pipeline_mode<synchronous>, transform_indices = @transform_2, window_bounds = array<i64: 36, 1>}, {pipeline_mode = #tpu.pipeline_mode<synchronous>, transform_indices = @transform_3, window_bounds = array<i64: 32, 40>}, {pipeline_mode = #tpu.pipeline_mode<synchronous>, transform_indices = @transform_4, window_bounds = array<i64: 32, 1>}, {pipeline_mode = #tpu.pipeline_mode<synchronous>, transform_indices = @transform_5, window_bounds = array<i64: 32, 32>}, {pipeline_mode = #tpu.pipeline_mode<synchronous>, transform_indices = @transform_6, window_bounds = array<i64: 32, 1>}, {pipeline_mode = #tpu.pipeline_mode<synchronous>, transform_indices = @transform_7, window_bounds = array<i64: 33, 32>}, {pipeline_mode = #tpu.pipeline_mode<synchronous>, transform_indices = @transform_8, window_bounds = array<i64: 33, 1>}, {transform_indices = @transform_9, window_bounds = array<i64: 33, 128>}]} {
    %c0 = arith.constant 0 : index
    %c0_0 = arith.constant 0 : index
    %0 = vector.load %arg1[%c0, %c0_0] : memref<3x128xf32, #tpu.memory_space<vmem>>, vector<3x128xf32>
    %c36 = arith.constant 36 : index
    %c0_1 = arith.constant 0 : index
    %1 = vector.load %arg11[%c36, %c0_1] : memref<40x128xf32, #tpu.memory_space<vmem>>, vector<3x128xf32>
    tpu.vector_store %arg11[%c36, %c0_1], %0 {strides = array<i32>} : memref<40x128xf32, #tpu.memory_space<vmem>>, vector<3x128xf32>,
    %cst = arith.constant 0.000000e+00 : f32
    %2 = vector.broadcast %cst : f32 to vector<1x128xf32>
    %c39 = arith.constant 39 : index
    %c0_2 = arith.constant 0 : index
    %3 = vector.load %arg11[%c39, %c0_2] : memref<40x128xf32, #tpu.memory_space<vmem>>, vector<1x128xf32>
    tpu.vector_store %arg11[%c39, %c0_2], %2 {strides = array<i32>} : memref<40x128xf32, #tpu.memory_space<vmem>>, vector<1x128xf32>,
    %c0_3 = arith.constant 0 : index
    %c0_4 = arith.constant 0 : index
    %4 = vector.load %arg1[%c0_3, %c0_4] : memref<3x128xf32, #tpu.memory_space<vmem>>, vector<1x128xf32>
    %c0_5 = arith.constant 0 : index
    %c0_6 = arith.constant 0 : index
    %5 = vector.load %arg2[%c0_5, %c0_6] : memref<36x1xf32, #tpu.memory_space<vmem>>, vector<12x1xf32>
    %c0_7 = arith.constant 0 : index
    %c0_8 = arith.constant 0 : index
    %6 = vector.load %arg3[%c0_7, %c0_8] : memref<36x1xf32, #tpu.memory_space<vmem>>, vector<12x1xf32>
    %7 = vector.broadcast %4 : vector<1x128xf32> to vector<12x128xf32>
    %8 = vector.broadcast %5 : vector<12x1xf32> to vector<12x128xf32>
    %9 = arith.mulf %7, %8 : vector<12x128xf32>
    %10 = vector.broadcast %6 : vector<12x1xf32> to vector<12x128xf32>
    %11 = arith.addf %9, %10 : vector<12x128xf32>
    %12 = math.sin %11 : vector<12x128xf32>
    %c0_9 = arith.constant 0 : index
    %c0_10 = arith.constant 0 : index
    %13 = vector.load %arg11[%c0_9, %c0_10] : memref<40x128xf32, #tpu.memory_space<vmem>>, vector<12x128xf32>
    tpu.vector_store %arg11[%c0_9, %c0_10], %12 {strides = array<i32>} : memref<40x128xf32, #tpu.memory_space<vmem>>, vector<12x128xf32>,
    %c1 = arith.constant 1 : index
    %c0_11 = arith.constant 0 : index
    %14 = vector.load %arg1[%c1, %c0_11] : memref<3x128xf32, #tpu.memory_space<vmem>>, vector<1x128xf32>
    %c12 = arith.constant 12 : index
    %c0_12 = arith.constant 0 : index
    %15 = vector.load %arg2[%c12, %c0_12] : memref<36x1xf32, #tpu.memory_space<vmem>>, vector<12x1xf32>
    %c12_13 = arith.constant 12 : index
    %c0_14 = arith.constant 0 : index
    %16 = vector.load %arg3[%c12_13, %c0_14] : memref<36x1xf32, #tpu.memory_space<vmem>>, vector<12x1xf32>
    %17 = vector.broadcast %14 : vector<1x128xf32> to vector<12x128xf32>
    %18 = vector.broadcast %15 : vector<12x1xf32> to vector<12x128xf32>
    %19 = arith.mulf %17, %18 : vector<12x128xf32>
    %20 = vector.broadcast %16 : vector<12x1xf32> to vector<12x128xf32>
    %21 = arith.addf %19, %20 : vector<12x128xf32>
    %22 = math.sin %21 : vector<12x128xf32>
    %c12_15 = arith.constant 12 : index
    %c0_16 = arith.constant 0 : index
    %23 = vector.load %arg11[%c12_15, %c0_16] : memref<40x128xf32, #tpu.memory_space<vmem>>, vector<12x128xf32>
    tpu.vector_store %arg11[%c12_15, %c0_16], %22 {strides = array<i32>} : memref<40x128xf32, #tpu.memory_space<vmem>>, vector<12x128xf32>,
    %c2 = arith.constant 2 : index
    %c0_17 = arith.constant 0 : index
    %24 = vector.load %arg1[%c2, %c0_17] : memref<3x128xf32, #tpu.memory_space<vmem>>, vector<1x128xf32>
    %c24 = arith.constant 24 : index
    %c0_18 = arith.constant 0 : index
    %25 = vector.load %arg2[%c24, %c0_18] : memref<36x1xf32, #tpu.memory_space<vmem>>, vector<12x1xf32>
    %c24_19 = arith.constant 24 : index
    %c0_20 = arith.constant 0 : index
    %26 = vector.load %arg3[%c24_19, %c0_20] : memref<36x1xf32, #tpu.memory_space<vmem>>, vector<12x1xf32>
    %27 = vector.broadcast %24 : vector<1x128xf32> to vector<12x128xf32>
    %28 = vector.broadcast %25 : vector<12x1xf32> to vector<12x128xf32>
    %29 = arith.mulf %27, %28 : vector<12x128xf32>
    %30 = vector.broadcast %26 : vector<12x1xf32> to vector<12x128xf32>
    %31 = arith.addf %29, %30 : vector<12x128xf32>
    %32 = math.sin %31 : vector<12x128xf32>
    %c24_21 = arith.constant 24 : index
    %c0_22 = arith.constant 0 : index
    %33 = vector.load %arg11[%c24_21, %c0_22] : memref<40x128xf32, #tpu.memory_space<vmem>>, vector<12x128xf32>
    tpu.vector_store %arg11[%c24_21, %c0_22], %32 {strides = array<i32>} : memref<40x128xf32, #tpu.memory_space<vmem>>, vector<12x128xf32>,
    %c0_23 = arith.constant 0 : index
    %c0_24 = arith.constant 0 : index
    %34 = vector.load %arg11[%c0_23, %c0_24] : memref<40x128xf32, #tpu.memory_space<vmem>>, vector<40x128xf32>
    %35 = arith.truncf %34 : vector<40x128xf32> to vector<40x128xbf16>
    %c0_25 = arith.constant 0 : index
    %c0_26 = arith.constant 0 : index
    %36 = vector.load %arg4[%c0_25, %c0_26] : memref<32x40xbf16, #tpu.memory_space<vmem>>, vector<32x40xbf16>
    %cst_27 = arith.constant dense<0.000000e+00> : vector<32x128xf32>
    %37 = tpu.matmul %36, %35, %cst_27 {dimension_numbers = #tpu.dot_dimension_numbers<[1], [0], [0], [1], [0, 0, 1, 1], [], []>} : vector<32x40xbf16>, vector<40x128xbf16>, vector<32x128xf32> -> vector<32x128xf32>
    %c0_28 = arith.constant 0 : index
    %c0_29 = arith.constant 0 : index
    %38 = vector.load %arg5[%c0_28, %c0_29] : memref<32x1xf32, #tpu.memory_space<vmem>>, vector<32x1xf32>
    %39 = vector.broadcast %38 : vector<32x1xf32> to vector<32x128xf32>
    %40 = arith.addf %37, %39 : vector<32x128xf32>
    %cst_30 = arith.constant 0.000000e+00 : f32
    %41 = vector.broadcast %cst_30 : f32 to vector<32x128xf32>
    %42 = arith.maximumf %40, %41 : vector<32x128xf32>
    %c0_31 = arith.constant 0 : index
    %c0_32 = arith.constant 0 : index
    %43 = vector.load %arg6[%c0_31, %c0_32] : memref<32x32xbf16, #tpu.memory_space<vmem>>, vector<32x32xbf16>
    %44 = arith.truncf %42 : vector<32x128xf32> to vector<32x128xbf16>
    %cst_33 = arith.constant dense<0.000000e+00> : vector<32x128xf32>
    %45 = tpu.matmul %43, %44, %cst_33 {dimension_numbers = #tpu.dot_dimension_numbers<[1], [0], [0], [1], [0, 0, 1, 1], [], []>} : vector<32x32xbf16>, vector<32x128xbf16>, vector<32x128xf32> -> vector<32x128xf32>
    %c0_34 = arith.constant 0 : index
    %c0_35 = arith.constant 0 : index
    %46 = vector.load %arg7[%c0_34, %c0_35] : memref<32x1xf32, #tpu.memory_space<vmem>>, vector<32x1xf32>
    %47 = vector.broadcast %46 : vector<32x1xf32> to vector<32x128xf32>
    %48 = arith.addf %45, %47 : vector<32x128xf32>
    %cst_36 = arith.constant 0.000000e+00 : f32
    %49 = vector.broadcast %cst_36 : f32 to vector<32x128xf32>
    %50 = arith.maximumf %48, %49 : vector<32x128xf32>
    %c0_37 = arith.constant 0 : index
    %c0_38 = arith.constant 0 : index
    %51 = vector.load %arg8[%c0_37, %c0_38] : memref<33x32xf32, #tpu.memory_space<vmem>>, vector<33x32xf32>
    %cst_39 = arith.constant dense<0.000000e+00> : vector<33x128xf32>
    %52 = tpu.matmul %51, %50, %cst_39 {dimension_numbers = #tpu.dot_dimension_numbers<[1], [0], [0], [1], [0, 0, 1, 1], [], []>} : vector<33x32xf32>, vector<32x128xf32>, vector<33x128xf32> -> vector<33x128xf32>
    %c0_40 = arith.constant 0 : index
    %c0_41 = arith.constant 0 : index
    %53 = vector.load %arg9[%c0_40, %c0_41] : memref<33x1xf32, #tpu.memory_space<vmem>>, vector<33x1xf32>
    %54 = vector.broadcast %53 : vector<33x1xf32> to vector<33x128xf32>
    %55 = arith.addf %52, %54 : vector<33x128xf32>
    %c0_42 = arith.constant 0 : index
    %c0_43 = arith.constant 0 : index
    %56 = vector.load %arg10[%c0_42, %c0_43] : memref<33x128xf32, #tpu.memory_space<vmem>>, vector<33x128xf32>
    tpu.vector_store %arg10[%c0_42, %c0_43], %55 {strides = array<i32>} : memref<33x128xf32, #tpu.memory_space<vmem>>, vector<33x128xf32>,
    return
  }
  func.func @transform_0(%arg0: i32) -> (i32, i32) {
    %c0_i32 = arith.constant 0 : i32
    %c0_i32_0 = arith.constant 0 : i32
    return %c0_i32, %arg0 : i32, i32
  }
  func.func @transform_1(%arg0: i32) -> (i32, i32) {
    %c0_i32 = arith.constant 0 : i32
    %c0_i32_0 = arith.constant 0 : i32
    %c0_i32_1 = arith.constant 0 : i32
    return %c0_i32, %c0_i32_0 : i32, i32
  }
  func.func @transform_2(%arg0: i32) -> (i32, i32) {
    %c0_i32 = arith.constant 0 : i32
    %c0_i32_0 = arith.constant 0 : i32
    %c0_i32_1 = arith.constant 0 : i32
    return %c0_i32, %c0_i32_0 : i32, i32
  }
  func.func @transform_3(%arg0: i32) -> (i32, i32) {
    %c0_i32 = arith.constant 0 : i32
    %c0_i32_0 = arith.constant 0 : i32
    %c0_i32_1 = arith.constant 0 : i32
    return %c0_i32, %c0_i32_0 : i32, i32
  }
  func.func @transform_4(%arg0: i32) -> (i32, i32) {
    %c0_i32 = arith.constant 0 : i32
    %c0_i32_0 = arith.constant 0 : i32
    %c0_i32_1 = arith.constant 0 : i32
    return %c0_i32, %c0_i32_0 : i32, i32
  }
  func.func @transform_5(%arg0: i32) -> (i32, i32) {
    %c0_i32 = arith.constant 0 : i32
    %c0_i32_0 = arith.constant 0 : i32
    %c0_i32_1 = arith.constant 0 : i32
    return %c0_i32, %c0_i32_0 : i32, i32
  }
  func.func @transform_6(%arg0: i32) -> (i32, i32) {
    %c0_i32 = arith.constant 0 : i32
    %c0_i32_0 = arith.constant 0 : i32
    %c0_i32_1 = arith.constant 0 : i32
    return %c0_i32, %c0_i32_0 : i32, i32
  }
  func.func @transform_7(%arg0: i32) -> (i32, i32) {
    %c0_i32 = arith.constant 0 : i32
    %c0_i32_0 = arith.constant 0 : i32
    %c0_i32_1 = arith.constant 0 : i32
    return %c0_i32, %c0_i32_0 : i32, i32
  }
  func.func @transform_8(%arg0: i32) -> (i32, i32) {
    %c0_i32 = arith.constant 0 : i32
    %c0_i32_0 = arith.constant 0 : i32
    %c0_i32_1 = arith.constant 0 : i32
    return %c0_i32, %c0_i32_0 : i32, i32
  }
  func.func @transform_9(%arg0: i32) -> (i32, i32) {
    %c0_i32 = arith.constant 0 : i32
    %c0_i32_0 = arith.constant 0 : i32
    return %c0_i32, %arg0 : i32, i32
  }
}

</mosaic_0001>

<bundles_post_ra>
// kernel: sdf_forward.1
= control target key start
LH: loop header
LB: loop body
LE: loop exit
PB: predicated region body
PF: predicated region fallthrough
CT: control target
= control target key end

     0   :  { %s1807_s30 = smov 0   ;;  %s1809_s10 = smov 0   ;;  %s2444_s0 = inlined_call_operand.vmem [shape: f32[3,256], index: 0, kind: input, shape index: {}]   ;;  %s2445_s1 = inlined_call_operand.vmem [shape: f32[36,1], index: 1, kind: input, shape index: {}]   ;;  %s2446_s2 = inlined_call_operand.vmem [shape: f32[36,1], index: 2, kind: input, shape index: {}]   ;;  %s2447_s3 = inlined_call_operand.vmem [shape: bf16[32,40], index: 3, kind: input, shape index: {}]   ;;  %s2448_s4 = inlined_call_operand.vmem [shape: f32[32,1], index: 4, kind: input, shape index: {}]   ;;  %s2449_s5 = inlined_call_operand.vmem [shape: bf16[32,32], index: 5, kind: input, shape index: {}]   ;;  %s2450_s6 = inlined_call_operand.vmem [shape: f32[32,1], index: 6, kind: input, shape index: {}]   ;;  %s2451_s7 = inlined_call_operand.vmem [shape: f32[33,32], index: 7, kind: input, shape index: {}]   ;;  %s2452_s8 = inlined_call_operand.vmem [shape: f32[33,1], index: 8, kind: input, shape index: {}]   ;;  %s2453_s9 = inlined_call_operand.vmem [shape: f32[33,256], index: 9, kind: output, shape index: {}]  }
   0x1   :  { %s1811_s11 = smov 0  }
   0x2 LB: > { %s1820_s12 = sadd.s32 4294967295, %s1745_s11   ;;  %s1822_s13 = sadd.s32 1, %s1745_s11   ;;  %s1745_s11 = sphi %s1811_s11, %s2465_s11   ;;  %s1741_s10 = sphi %s1809_s10, %s2464_s10   ;;  %s1737_s30 = sphi %s1807_s30, %s2463_s30  }
   0x3   : > { %s217_s14 = ssub.s32 %s1745_s11, %s1822_s13  ;;  %s220_s15 = sadd.s32 1, %s1741_s10 }
   0x4   : > { %p218_p0 = scmp.eq.s32.totalorder %s217_s14, 0  ;;  %p230_p1 = scmp.ne.s32.totalorder %s1741_s10, %s1737_s30 }
   0x5   : > { %p231_p2 = scmp.eq.s32.totalorder %s1820_s12, 1  ;;  %p1523_p3 = scmp.ge.s32.totalorder %s1745_s11, 1 }
   0x6   : > { %s1830_s16 = scalar_select %p218_p0, %s1741_s10, %s220_s15  }
   0x7   : > { %p1832_p4 = por %p231_p2, %p230_p1  ;;  %p286_p5 = scmp.lt.s32.totalorder %s1745_s11, 3 }
   0x9   : > { %p287_p6 = pnand %p1523_p3, %p286_p5 }
   0xa   : > { %v572_v0 = vld [vmem:[%s2445_s1 + $0xc] sm:$0xff] (!%p287_p6)  ;;  %v329_v1 = vld [vmem:[%s2445_s1] sm:$0xff] (!%p287_p6)  ;;  %p320_p7 = scmp.lt.s32.totalorder (!%p287_p6), %s1820_s12, 1  ;;  %v1747_v2 = vmov (!%p287_p6), 0   ;;  %v330_v4 = vld [vmem:[%s2445_s1 + $0x8] sm:$0xf] (!%p287_p6) }
   0xb   : > { %290 = sbr.rel (%p287_p6) target bundleno = 1045 (0x415), region = 56  ;;  %1694 = vset.pattern.permute.xlu1 (!%p287_p6), %v1747_v2  ;;  %1693 = vset.pattern.permute.xlu0 (!%p287_p6), %v1747_v2  ;;  %v331_v3 = vld [vmem:[%s2446_s2] sm:$0xff] (!%p287_p6)  ;;  %v574_v5 = vld [vmem:[%s2446_s2 + $0xc] sm:$0xff] (!%p287_p6)  ;;  %v332_v6 = vld [vmem:[%s2446_s2 + $0x8] sm:$0xf] (!%p287_p6)  ;;  %s317_s15 = sand.u32 (!%p287_p6), 1, %s1737_s30  }
   0xc   : > { %582 = vperm.xlu1 (!%p287_p6), %1694, %v572_v0   ;;  %339 = vperm.xlu0 (!%p287_p6), %1693, %v329_v1   ;;  %v815_v8 = vld [vmem:[%s2445_s1 + $0x18] sm:$0xff] (!%p287_p6)  ;;  %v573_v9 = vld [vmem:[%s2445_s1 + $0x14] sm:$0xf] (!%p287_p6)  ;;  %v818_v12 = vld [vmem:[%s2446_s2 + $0x20] sm:$0xf] (!%p287_p6)  ;;  %s1634_s18 = smul.u32 (!%p287_p6), 40, %s317_s15 }
   0xd   : > { %v817_v10 = vld [vmem:[%s2446_s2 + $0x18] sm:$0xff] (!%p287_p6)  ;;  %v575_v11 = vld [vmem:[%s2446_s2 + $0x14] sm:$0xf] (!%p287_p6)  ;;  %v816_v13 = vld [vmem:[%s2445_s1 + $0x20] sm:$0xf] (!%p287_p6) }
   0xe   : > { %v1070_v14 = vld [vmem:[%s2448_s4 + $0x8] sm:$0xff] (!%p287_p6)  ;;  %v1069_v15 = vld [vmem:[%s2448_s4] sm:$0xff] (!%p287_p6)  ;;  %v1072_v16 = vld [vmem:[%s2448_s4 + $0x18] sm:$0xff] (!%p287_p6)  ;;  %v1748_v62 = vmov (!%p287_p6), 683565275   ;;  %s319_s20 = scalar_lea.vmem (!%p287_p6), [#allocation3], %s1634_s18 }
   0xf   : > { %v1071_v17 = vld [vmem:[%s2448_s4 + $0x10] sm:$0xff] (!%p287_p6)  ;;  %v1174_v18 = vld [vmem:[%s2450_s6 + $0x8] sm:$0xff] (!%p287_p6)  ;;  %v1173_v19 = vld [vmem:[%s2450_s6] sm:$0xff] (!%p287_p6)  ;;  %v1749_v0 = vmov (!%p287_p6), 2475754826  }
  0x10   : > { %351 = vperm.xlu1 (!%p287_p6), %1694, %v331_v3   ;;  %344 = vperm.xlu0 (!%p287_p6), %1693, %v330_v4   ;;  %v1176_v20 = vld [vmem:[%s2450_s6 + $0x18] sm:$0xff] (!%p287_p6)  ;;  %v1175_v21 = vld [vmem:[%s2450_s6 + $0x10] sm:$0xff] (!%p287_p6)  ;;  %v1273_v22 = vld [vmem:[%s2452_s8 + $0x8] sm:$0xff] (!%p287_p6)  ;;  %v1750_v3 = vmov (!%p287_p6), 2131351028  }
  0x11   : > { %v1272_v23 = vld [vmem:[%s2452_s8] sm:$0xff] (!%p287_p6)  ;;  %v1275_v24 = vld [vmem:[%s2452_s8 + $0x18] sm:$0xff] (!%p287_p6)  ;;  %v1274_v25 = vld [vmem:[%s2452_s8 + $0x10] sm:$0xff] (!%p287_p6) }
  0x12   : > { %s321_s22 = scalar_select %p320_p7, %s1820_s12, 1  ;;  %v1276_v26 = vld [vmem:[%s2452_s8 + $0x20] sm:$0x1] }
  0x13   : > { %s1565_s30 = sshll.u32 (%p1832_p4), %s1820_s12, 3 }
  0x14   : > { %s1524_s27 = sshll.u32 %s321_s22, 2  ;;  %594 = vperm.xlu1 %1694, %v574_v5   ;;  %356 = vperm.xlu0 %1693, %v332_v6   ;;  %v1751_v5 = vmov 2102212464   ;;  %s1420_s23 = scalar_lea.vmem (%p1832_p4), %s2453_s9, %s1565_s30 }
  0x15   : > { %s1859_s19 = scalar_lea.vmem %s2444_s0, %s1524_s27 }
  0x16   : > { %v325_v7 = vld [vmem:[%s1859_s19] sm:$0x7] }
  0x17   : > { %326 = vst [vmem:[#allocation2 + $0x24] sm:$0x7] %v325_v7  ;;  %v1525_v29 = vld [vmem:[%s1859_s19] ss:$0 sm:$0xff]  ;;  %v1921_v31 = vld [vmem:[%s1859_s19 + $0x1] ss:$0 sm:$0xff] }
  0x18   : > { %825 = vperm.xlu1 %1694, %v815_v8   ;;  %587 = vperm.xlu0 %1693, %v573_v9   ;;  %v1752_v7 = vmov 920167782  }
  0x1c   : > { %837 = vperm.xlu1 %1694, %v817_v10   ;;  %599 = vperm.xlu0 %1693, %v575_v11  }
  0x20   : > { %842 = vperm.xlu1 %1694, %v818_v12   ;;  %830 = vperm.xlu0 %1693, %v816_v13  }
  0x24   : > { %1080 = vperm.xlu1 %1694, %v1070_v14   ;;  %1075 = vperm.xlu0 %1693, %v1069_v15   ;;  %v1753_v14 = vmov 1326507024  }
  0x28   : > { %1090 = vperm.xlu1 %1694, %v1072_v16   ;;  %1085 = vperm.xlu0 %1693, %v1071_v17  }
  0x2c   : > { %1184 = vperm.xlu1 %1694, %v1174_v18   ;;  %1179 = vperm.xlu0 %1693, %v1173_v19  }
  0x30   : > { %1194 = vperm.xlu1 %1694, %v1176_v20   ;;  %1189 = vperm.xlu0 %1693, %v1175_v21  }
  0x34   : > { %1284 = vperm.xlu1 %1694, %v1273_v22   ;;  %1279 = vperm.xlu0 %1693, %v1272_v23  }
  0x38   : > { %1294 = vperm.xlu1 %1694, %v1275_v24   ;;  %1289 = vperm.xlu0 %1693, %v1274_v25  }
  0x3c   : > { %1299 = vperm.xlu0 %1693, %v1276_v26  }
  0x8b   : > { %v583_v27 = vpop.permute.xlu1 %582  ;;  %v340_v28 = vpop.permute.xlu0 %339 }
  0x8c   : > { %v347_v30 = vmul.f32 %v1525_v29, %v340_v28  ;;  %v590_v35 = vmul.f32 %v1921_v31, %v583_v27 }
  0x8f   : > { %v352_v32 = vpop.permute.xlu1 %351  ;;  %v345_v33 = vpop.permute.xlu0 %344 }
  0x90   : > { %v1923_v34 = vadd.f32 %v352_v32, %v347_v30  ;;  %v348_v38 = vmul.f32 %v1525_v29, %v345_v33 }
  0x92   : > { %v361_v36 = vand.u32 2147483647, %v1923_v34  ;;  %v364_v37 = vand.u32 2139095040, %v1923_v34  ;;  %vm363_vm13 = vcmp.lt.s32.totalorder %v1923_v34, 0 }
  0x93   : > { %v595_v39 = vpop.permute.xlu1 %594  ;;  %v357_v40 = vpop.permute.xlu0 %356 }
  0x94   : > { %v365_v41 = vshrl.u32 %v364_v37, 23  ;;  %v1928_v42 = vadd.f32 %v595_v39, %v590_v35  ;;  %v368_v43 = vand.u32 8388607, %v361_v36  ;;  %v1932_v44 = vadd.f32 %v357_v40, %v348_v38 }
  0x96   : > { %v1526_v45 = vadd.s32 4294967169, %v365_v41  ;;  %v604_v46 = vand.u32 2147483647, %v1928_v42  ;;  %v607_v47 = vand.u32 2139095040, %v1928_v42  ;;  %v369_v49 = vor.u32 8388608, %v368_v43 }
  0x97   : > { %v468_v52 = vand.u32 2139095040, %v1932_v44  ;;  %v465_v40 = vand.u32 2147483647, %v1932_v44 }
  0x98   : > { %v371_v48 = vadd.s32 1, %v1526_v45  ;;  %v608_v50 = vshrl.u32 %v607_v47, 23  ;;  %v611_v51 = vand.u32 8388607, %v604_v46  ;;  %v1939_v58 = vshll.u32 %v369_v49, 8 }
  0x99   : > { %v469_v55 = vshrl.u32 %v468_v52, 23 }
  0x9a   : > { %vm372_vm0 = vcmp.gt.s32.totalorder %v371_v48, 0  ;;  %v1535_v54 = vadd.s32 4294967169, %v608_v50  ;;  %v612_v59 = vor.u32 8388608, %v611_v51 }
  0x9b   : > { %v373_v53 = vsel %vm372_vm0, %v371_v48, 0  ;;  %v1530_v2 = vadd.s32 4294967169, %v469_v55  ;;  %vm2046_vm0 = vcmp.le.f32.partialorder %v361_v36, 0.7853982 }
  0x9c   : > { %v374_v56 = vshrl.u32 %v373_v53, 5  ;;  %v375_v57 = vand.u32 31, %v373_v53  ;;  %v614_v60 = vadd.s32 1, %v1535_v54  ;;  %v1961_v39 = vshll.u32 %v612_v59, 8 }
  0x9d   : > { %v475_v50 = vadd.s32 1, %v1530_v2 }
  0x9e   : > { %v376_v61 = vsub.s32 32, %v375_v57  ;;  %v378_v63 = vshll.u32 %v1748_v62, %v375_v57  ;;  %v381_v1 = vshll.u32 %v1749_v0, %v375_v57  ;;  %v384_v4 = vshll.u32 %v1750_v3, %v375_v57 }
  0x9f   : > { %v387_v6 = vshll.u32 %v1751_v5, %v375_v57  ;;  %v390_v8 = vshll.u32 %v1752_v7, %v375_v57  ;;  %vm393_vm1 = vcmp.lt.s32.totalorder %v374_v56, 1  ;;  %vm394_vm2 = vcmp.lt.s32.totalorder %v374_v56, 2 }
  0xa0   : > { %v379_v9 = vshrl.u32 %v1749_v0, %v376_v61  ;;  %v382_v10 = vshrl.u32 %v1750_v3, %v376_v61  ;;  %v385_v11 = vshrl.u32 %v1751_v5, %v376_v61  ;;  %v377_v12 = vshrl.u32 %v1748_v62, %v376_v61 }
  0xa1   : > { %v388_v13 = vshrl.u32 %v1752_v7, %v376_v61  ;;  %v391_v15 = vshrl.u32 %v1753_v14, %v376_v61  ;;  %vm395_vm3 = vcmp.lt.s32.totalorder %v374_v56, 3  ;;  %vm615_vm4 = vcmp.gt.s32.totalorder %v614_v60, 0 }
  0xa2   : > { %v380_v16 = vor.u32 %v379_v9, %v378_v63  ;;  %v383_v17 = vor.u32 %v382_v10, %v381_v1  ;;  %v386_v18 = vor.u32 %v385_v11, %v384_v4  ;;  %vm396_vm5 = vcmp.lt.s32.totalorder %v374_v56, 4 }
  0xa3   : > { %v389_v19 = vor.u32 %v388_v13, %v387_v6  ;;  %v392_v20 = vor.u32 %v391_v15, %v390_v8  ;;  %v616_v21 = vsel %vm615_vm4, %v614_v60, 0  ;;  %vm476_vm10 = vcmp.gt.s32.totalorder %v475_v50, 0 }
  0xa4   : > { %v397_v22 = vsel %vm393_vm1, %v377_v12, %v380_v16  ;;  %v398_v23 = vsel %vm396_vm5, %v386_v18, 2102212464  ;;  %v401_v24 = vsel %vm393_vm1, %v380_v16, %v383_v17  ;;  %v405_v25 = vsel %vm393_vm1, %v383_v17, %v386_v18 }
  0xa5   : > { %v399_v26 = vsel %vm395_vm3, %v383_v17, %v398_v23  ;;  %v402_v27 = vsel %vm396_vm5, %v389_v19, 920167782  ;;  %v406_v28 = vsel %vm396_vm5, %v392_v20, 1326507024  ;;  %v617_v29 = vshrl.u32 %v616_v21, 5 }
  0xa6   : > { %v400_v30 = vsel %vm394_vm2, %v397_v22, %v399_v26  ;;  %v403_v32 = vsel %vm395_vm3, %v386_v18, %v402_v27  ;;  %v407_v33 = vsel %vm395_vm3, %v389_v19, %v406_v28  ;;  %v618_v35 = vand.u32 31, %v616_v21 }
  0xa7   : > { %v404_v37 = vsel %vm394_vm2, %v401_v24, %v403_v32  ;;  %v408_v38 = vsel %vm394_vm2, %v405_v25, %v407_v33  ;;  %v416_v48 = vmul.u32 %v1939_v58, %v400_v30  ;;  %vm636_vm6 = vcmp.lt.s32.totalorder %v617_v29, 1 }
  0xa8   : > { %v1965_v41 = vmul.u32.u64.low %v1939_v58, %v408_v38  ;;  %v1966_v43 = vmul.u32.u64.high %v1939_v58, %v408_v38, %v1965_v41  ;;  %v1969_v45 = vmul.u32.u64.low %v1939_v58, %v404_v37  ;;  %v1970_v47 = vmul.u32.u64.high %v1939_v58, %v404_v37, %v1969_v45 }
  0xa9   : > { %v619_v49 = vsub.s32 32, %v618_v35  ;;  %v621_v51 = vshll.u32 %v1748_v62, %v618_v35  ;;  %v624_v52 = vshll.u32 %v1749_v0, %v618_v35  ;;  %v627_v53 = vshll.u32 %v1750_v3, %v618_v35  ;;  %v826_v41 = vpop.permute.xlu1 %825 }
  0xaa   : > { %v630_v54 = vshll.u32 %v1751_v5, %v618_v35  ;;  %v633_v59 = vshll.u32 %v1752_v7, %v618_v35  ;;  %vm418_vm7 = vc.u32 %v1966_v43, %v1969_v45  ;;  %v419_v58 = vadd.s32 1, %v1970_v47 }
  0xab   : > { %v622_v55 = vshrl.u32 %v1749_v0, %v619_v49  ;;  %v625_v56 = vshrl.u32 %v1750_v3, %v619_v49  ;;  %v628_v57 = vshrl.u32 %v1751_v5, %v619_v49  ;;  %v631_v60 = vshrl.u32 %v1752_v7, %v619_v49 }
  0xac   : > { %vm637_vm8 = vcmp.lt.s32.totalorder %v617_v29, 2  ;;  %v634_v2 = vshrl.u32 %v1753_v14, %v619_v49  ;;  %v420_v4 = vsel %vm418_vm7, %v419_v58, %v1970_v47  ;;  %v620_v6 = vshrl.u32 %v1748_v62, %v619_v49 }
  0xad   : > { %v623_v61 = vor.u32 %v622_v55, %v621_v51  ;;  %v626_v63 = vor.u32 %v625_v56, %v624_v52  ;;  %v629_v1 = vor.u32 %v628_v57, %v627_v53  ;;  %v632_v8 = vor.u32 %v631_v60, %v630_v54 }
  0xae   : > { %vm639_vm9 = vcmp.lt.s32.totalorder %v617_v29, 4  ;;  %v421_v9 = vadd.s32 %v420_v4, %v416_v48  ;;  %v635_v10 = vor.u32 %v634_v2, %v633_v59  ;;  %vm638_vm11 = vcmp.lt.s32.totalorder %v617_v29, 3 }
  0xaf   : > { %v641_v11 = vsel %vm639_vm9, %v629_v1, 2102212464  ;;  %v644_v12 = vsel %vm636_vm6, %v623_v61, %v626_v63  ;;  %v645_v13 = vsel %vm639_vm9, %v632_v8, 920167782  ;;  %v648_v15 = vsel %vm636_vm6, %v626_v63, %v629_v1 }
  0xb0   : > { %v422_v16 = vadd.s32 536870912, %v421_v9  ;;  %v640_v17 = vsel %vm636_vm6, %v620_v6, %v623_v61  ;;  %v646_v18 = vsel %vm638_vm11, %v629_v1, %v645_v13  ;;  %v649_v19 = vsel %vm639_vm9, %v635_v10, 1326507024 }
  0xb1   : > { %v642_v20 = vsel %vm638_vm11, %v626_v63, %v641_v11  ;;  %v647_v21 = vsel %vm637_vm8, %v644_v12, %v646_v18  ;;  %v650_v22 = vsel %vm638_vm11, %v632_v8, %v649_v19  ;;  %v477_v23 = vsel %vm476_vm10, %v475_v50, 0  ;;  %v2016_v50 = vld [vmem:[%s1859_s19 + $0x2] ss:$0 sm:$0xff]  ;;  %v838_v63 = vpop.permute.xlu1 %837 }
  0xb2   : > { %v1993_v24 = vshrl.u32 %v422_v16, 30  ;;  %v651_v25 = vsel %vm637_vm8, %v648_v15, %v650_v22  ;;  %v1997_v26 = vmul.u32.u64.low %v1961_v39, %v647_v21  ;;  %v1998_v27 = vmul.u32.u64.high %v1961_v39, %v647_v21, %v1997_v26 }
  0xb3   : > { %v2002_v28 = vmul.u32.u64.low %v1961_v39, %v651_v25  ;;  %v2003_v30 = vmul.u32.u64.high %v1961_v39, %v651_v25, %v2002_v28  ;;  %v479_v32 = vand.u32 31, %v477_v23  ;;  %v643_v35 = vsel %vm637_vm8, %v640_v17, %v642_v20 }
  0xb4   : > { %v424_v33 = vshll.u32 %v1993_v24, 30  ;;  %v472_v37 = vand.u32 8388607, %v465_v40  ;;  %v662_v48 = vadd.s32 1, %v1998_v27  ;;  %v659_v49 = vmul.u32 %v1961_v39, %v643_v35 }
  0xb5   : > { %v480_v38 = vsub.s32 32, %v479_v32  ;;  %vm661_vm12 = vc.u32 %v2003_v30, %v1997_v26  ;;  %v491_v57 = vshll.u32 %v1751_v5, %v479_v32  ;;  %v833_v39 = vmul.f32 %v2016_v50, %v826_v41 }
  0xb6   : > { %v2009_v47 = vsub.s32 %v421_v9, %v424_v33  ;;  %v663_v29 = vsel %vm661_vm12, %v662_v48, %v1998_v27  ;;  %v473_v52 = vor.u32 8388608, %v472_v37  ;;  %v2025_v58 = vshrl.u32 %v477_v23, 5 }
  0xb7   : > { %v664_v53 = vadd.s32 %v663_v29, %v659_v49  ;;  %v492_v54 = vshrl.u32 %v1752_v7, %v480_v38  ;;  %v483_v56 = vshrl.u32 %v1749_v0, %v480_v38  ;;  %v486_v60 = vshrl.u32 %v1750_v3, %v480_v38 }
  0xb8   : > { %v427_v51 = vsub.s32 0, %v2009_v47  ;;  %v489_v61 = vshrl.u32 %v1751_v5, %v480_v38  ;;  %v482_v2 = vshll.u32 %v1748_v62, %v479_v32  ;;  %v2030_v6 = vshll.u32 %v473_v52, 8 }
  0xb9   : > { %v665_v59 = vadd.s32 536870912, %v664_v53  ;;  %v493_v4 = vor.u32 %v492_v54, %v491_v57  ;;  %v485_v9 = vshll.u32 %v1749_v0, %v479_v32  ;;  %v488_v10 = vshll.u32 %v1750_v3, %v479_v32 }
  0xba   : > { %v1527_v55 = vmin.u32 %v427_v51, %v2009_v47  ;;  %v495_v11 = vshrl.u32 %v1753_v14, %v480_v38  ;;  %v484_v13 = vor.u32 %v483_v56, %v482_v2  ;;  %v494_v15 = vshll.u32 %v1752_v7, %v479_v32  ;;  %v588_v2 = vpop.permute.xlu0 %587 }
  0xbb   : > { %v666_v8 = vshrl.u32 %v665_v59, 30  ;;  %v2037_v16 = vadd.f32 %v838_v63, %v833_v39  ;;  %v487_v18 = vor.u32 %v486_v60, %v485_v9  ;;  %v490_v19 = vor.u32 %v489_v61, %v488_v10 }
  0xbc   : > { %v429_v1 = vclz %v1527_v55  ;;  %vm500_vm14 = vcmp.lt.s32.totalorder %v2025_v58, 4  ;;  %v417_v20 = vadd.s32 %v1969_v45, %v1966_v43  ;;  %v496_v21 = vor.u32 %v495_v11, %v494_v15 }
  0xbd   : > { %v667_v17 = vshll.u32 %v666_v8, 30  ;;  %v506_v22 = vsel %vm500_vm14, %v493_v4, 920167782  ;;  %v447_v27 = vsub.s32 4, %v1993_v24  ;;  %v481_v32 = vshrl.u32 %v1748_v62, %v480_v38 }
  0xbe   : > { %v1528_v12 = vadd.s32 4294967294, %v429_v1  ;;  %vm606_vm1 = vcmp.lt.s32.totalorder %v1928_v42, 0  ;;  %vm497_vm2 = vcmp.lt.s32.totalorder %v2025_v58, 1  ;;  %vm499_vm3 = vcmp.lt.s32.totalorder %v2025_v58, 3 }
  0xbf   : > { %v2051_v28 = vsub.s32 %v664_v53, %v667_v17  ;;  %v505_v45 = vsel %vm497_vm2, %v484_v13, %v487_v18  ;;  %v507_v35 = vsel %vm499_vm3, %v490_v19, %v506_v22  ;;  %v509_v37 = vsel %vm497_vm2, %v487_v18, %v490_v19 }
  0xc0   : > { %vm1529_vm15 = vcmp.lt.s32.totalorder %v1528_v12, 0  ;;  %v510_v49 = vsel %vm500_vm14, %v496_v21, 1326507024  ;;  %vm2069_vm4 = vcmp.le.f32.partialorder %v604_v46, 0.7853982  ;;  %vm498_vm5 = vcmp.lt.s32.totalorder %v2025_v58, 2 }
  0xc1   : > { %v432_v25 = vsel %vm1529_vm15, 0, %v1528_v12  ;;  %v670_v36 = vsub.s32 0, %v2051_v28  ;;  %v502_v52 = vsel %vm500_vm14, %v490_v19, 2102212464  ;;  %v508_v55 = vsel %vm498_vm5, %v505_v45, %v507_v35  ;;  %v600_v45 = vpop.permute.xlu0 %599 }
  0xc2   : > { %v433_v33 = vsub.s32 32, %v432_v25  ;;  %v437_v43 = vsub.s32 4294967266, %v432_v25  ;;  %v434_v38 = vshll.u32 %v2009_v47, %v432_v25  ;;  %v511_v47 = vsel %vm499_vm3, %v493_v4, %v510_v49 }
  0xc3   : > { %v1536_v29 = vmin.u32 %v670_v36, %v2051_v28  ;;  %v512_v46 = vsel %vm498_vm5, %v509_v37, %v511_v47  ;;  %v448_v56 = vsel %vm363_vm13, %v447_v27, %v1993_v24  ;;  %v690_v39 = vsub.s32 4, %v666_v8 }
  0xc4   : > { %v435_v41 = vshrl.u32 %v417_v20, %v433_v33  ;;  %v438_v48 = vadd.s32 127, %v437_v43  ;;  %v501_v59 = vsel %vm497_vm2, %v481_v32, %v484_v13  ;;  %v503_v61 = vsel %vm499_vm3, %v487_v18, %v502_v52 }
  0xc5   : > { %v672_v57 = vclz %v1536_v29  ;;  %v2091_v63 = vmul.u32.u64.low %v2030_v6, %v512_v46  ;;  %v2092_v1 = vmul.u32.u64.high %v2030_v6, %v512_v46, %v2091_v63  ;;  %v850_v24 = vand.u32 2139095040, %v2037_v16  ;;  %v831_v23 = vpop.permute.xlu0 %830 }
  0xc6   : > { %v436_v53 = vor.u32 %v435_v41, %v434_v38  ;;  %v439_v54 = vshll.u32 %v438_v48, 23  ;;  %v2095_v9 = vmul.u32.u64.low %v2030_v6, %v508_v55  ;;  %v2096_v10 = vmul.u32.u64.high %v2030_v6, %v508_v55, %v2095_v9 }
  0xc7   : > { %v1537_v4 = vadd.s32 4294967294, %v672_v57  ;;  %v450_v13 = vsel %vm2046_vm0, 0, %v448_v56  ;;  %v847_v15 = vand.u32 2147483647, %v2037_v16  ;;  %v691_v17 = vsel %vm606_vm1, %v690_v39, %v666_v8 }
  0xc8   : > { %v440_v60 = vor.u32 4788187, %v439_v54  ;;  %v443_v12 = vcvt.s32.f32 %v436_v53  ;;  %v504_v18 = vsel %vm498_vm5, %v501_v59, %v503_v61  ;;  %v851_v19 = vshrl.u32 %v850_v24, 23 }
  0xc9   : > { %vm1538_vm6 = vcmp.lt.s32.totalorder %v1537_v4, 0  ;;  %v660_v21 = vadd.s32 %v1997_v26, %v2003_v30  ;;  %vm522_vm7 = vc.u32 %v2092_v1, %v2095_v9  ;;  %v454_v25 = vadd.s32 3, %v450_v13 }
  0xca   : > { %v441_v11 = vand.u32 2147483647, %v440_v60  ;;  %v675_v22 = vsel %vm1538_vm6, 0, %v1537_v4  ;;  %v523_v33 = vadd.s32 1, %v2096_v10  ;;  %v693_v8 = vsel %vm2069_vm4, 0, %v691_v17 }
  0xcb   : > { %v676_v27 = vsub.s32 32, %v675_v22  ;;  %v680_v32 = vsub.s32 4294967266, %v675_v22  ;;  %v520_v58 = vmul.u32 %v2030_v6, %v504_v18  ;;  %v1544_v36 = vadd.s32 4294967169, %v851_v19 }
  0xcc   : > { %v444_v20 = vmul.f32 %v443_v12, %v441_v11  ;;  %v677_v35 = vshll.u32 %v2051_v28, %v675_v22  ;;  %v524_v30 = vsel %vm522_vm7, %v523_v33, %v2096_v10  ;;  %v591_v48 = vmul.f32 %v1921_v31, %v588_v2 }
  0xcd   : > { %v678_v37 = vshrl.u32 %v660_v21, %v676_v27  ;;  %v681_v26 = vadd.s32 127, %v680_v32  ;;  %v525_v41 = vadd.s32 %v524_v30, %v520_v58  ;;  %v857_v49 = vadd.s32 1, %v1544_v36 }
  0xce   : > { %v445_v43 = vxor.u32 2147483648, %v444_v20  ;;  %v2121_v6 = vand.u32 3, %v454_v25  ;;  %v697_v28 = vadd.s32 3, %v693_v8  ;;  %v854_v55 = vand.u32 8388607, %v847_v15 }
  0xcf   : > { %v679_v52 = vor.u32 %v678_v37, %v677_v35  ;;  %v682_v47 = vshll.u32 %v681_v26, 23  ;;  %v526_v53 = vadd.s32 536870912, %v525_v41  ;;  %vm858_vm8 = vcmp.gt.s32.totalorder %v857_v49, 0 }
  0xd0   : > { %v446_v38 = vsel %vm363_vm13, %v445_v43, %v444_v20  ;;  %v859_v46 = vsel %vm858_vm8, %v857_v49, 0  ;;  %v2127_v57 = vadd.f32 %v600_v45, %v591_v48  ;;  %vm460_vm9 = vcmp.eq.s32.totalorder %v2121_v6, 2 }
  0xd1   : > { %v449_v29 = vsel %vm2046_vm0, %v1923_v34, %v446_v38  ;;  %v683_v54 = vor.u32 4788187, %v682_v47  ;;  %v2125_v31 = vshrl.u32 %v526_v53, 30  ;;  %v861_v56 = vand.u32 31, %v859_v46 }
  0xd2   : > { %1699 = vcosq.f32 %v449_v29  ;;  %v686_v59 = vcvt.s32.f32 %v679_v52  ;;  %v2130_v60 = vand.u32 3, %v697_v28  ;;  %vm457_vm10 = vcmp.eq.s32.totalorder %v2121_v6, 0 }
  0xd3   : > { %1701 = vsinq.f32 %v449_v29  ;;  %v684_v39 = vand.u32 2147483647, %v683_v54  ;;  %v528_v61 = vshll.u32 %v2125_v31, 30  ;;  %v862_v63 = vsub.s32 32, %v861_v56 }
  0xd4   : > { %v2135_v4 = vadd.s32 %v2095_v9, %v2092_v1  ;;  %v855_v10 = vor.u32 8388608, %v854_v55  ;;  %v2138_v24 = vmul.f32 %v2016_v50, %v831_v23  ;;  %vm456_vm11 = vcmp.lt.s32.totalorder %v2121_v6, 2 }
  0xd5   : > { %v687_v2 = vmul.f32 %v686_v59, %v684_v39  ;;  %v2141_v11 = vsub.s32 %v525_v41, %v528_v61  ;;  %v865_v12 = vshrl.u32 %v1749_v0, %v862_v63  ;;  %v708_v13 = vand.u32 2147483647, %v2127_v57 }
  0xd6   : > { %v711_v17 = vand.u32 2139095040, %v2127_v57  ;;  %vm453_vm12 = vweird.f32 %v1923_v34  ;;  %v864_v1 = vshll.u32 %v1748_v62, %v861_v56  ;;  %v868_v9 = vshrl.u32 %v1750_v3, %v862_v63 }
  0xd7   : > { %v688_v18 = vxor.u32 2147483648, %v687_v2  ;;  %v871_v50 = vshrl.u32 %v1751_v5, %v862_v63  ;;  %v531_v19 = vsub.s32 0, %v2141_v11  ;;  %v867_v20 = vshll.u32 %v1749_v0, %v861_v56 }
  0xd8   : > { %v870_v21 = vshll.u32 %v1750_v3, %v861_v56  ;;  %v874_v22 = vshrl.u32 %v1752_v7, %v862_v63  ;;  %v2156_v27 = vshrl.u32 %v859_v46, 5  ;;  %v866_v32 = vor.u32 %v865_v12, %v864_v1 }
  0xd9   : > { %v689_v25 = vsel %vm606_vm1, %v688_v18, %v687_v2  ;;  %v873_v33 = vshll.u32 %v1751_v5, %v861_v56  ;;  %v1531_v58 = vmin.u32 %v531_v19, %v2141_v11  ;;  %v869_v36 = vor.u32 %v868_v9, %v867_v20 }
  0xda   : > { %v692_v8 = vsel %vm2069_vm4, %v1928_v42, %v689_v25  ;;  %v872_v45 = vor.u32 %v871_v50, %v870_v21  ;;  %v876_v26 = vshll.u32 %v1752_v7, %v861_v56  ;;  %v877_v30 = vshrl.u32 %v1753_v14, %v862_v63 }
  0xdb   : > { %1703 = vcosq.f32 %v692_v8  ;;  %v533_v41 = vclz %v1531_v58  ;;  %v875_v48 = vor.u32 %v874_v22, %v873_v33  ;;  %v863_v51 = vshrl.u32 %v1748_v62, %v862_v63 }
  0xdc   : > { %v1700_v43 = vpop.eup %1699  ;;  %1705 = vsinq.f32 %v692_v8  ;;  %v2168_v29 = vshll.u32 %v855_v10, 8  ;;  %v712_v52 = vshrl.u32 %v711_v17, 23  ;;  %v878_v53 = vor.u32 %v877_v30, %v876_v26 }
  0xdd   : > { %v1702_v35 = vpop.eup %1701  ;;  %v461_v37 = vxor.u32 2147483648, %v1700_v43  ;;  %v1532_v28 = vadd.s32 4294967294, %v533_v41  ;;  %vm879_vm13 = vcmp.lt.s32.totalorder %v2156_v27, 1  ;;  %vm703_vm14 = vcmp.eq.s32.totalorder %v2130_v60, 2 }
  0xde   : > { %v458_v38 = vxor.u32 2147483648, %v1702_v35  ;;  %vm881_vm15 = vcmp.lt.s32.totalorder %v2156_v27, 3  ;;  %vm882_vm0 = vcmp.lt.s32.totalorder %v2156_v27, 4  ;;  %v887_v55 = vsel %vm879_vm13, %v866_v32, %v869_v36 }
  0xdf   : > { %v462_v49 = vsel %vm460_vm9, %v461_v37, %v1702_v35  ;;  %vm700_vm1 = vcmp.eq.s32.totalorder %v2130_v60, 0  ;;  %vm467_vm2 = vcmp.lt.s32.totalorder %v1932_v44, 0  ;;  %vm1533_vm3 = vcmp.lt.s32.totalorder %v1532_v28, 0 }
  0xe0   : > { %v459_v47 = vsel %vm457_vm10, %v1700_v43, %v458_v38  ;;  %v884_v6 = vsel %vm882_vm0, %v872_v45, 2102212464  ;;  %v888_v56 = vsel %vm882_vm0, %v875_v48, 920167782  ;;  %vm699_vm4 = vcmp.lt.s32.totalorder %v2130_v60, 2 }
  0xe1   : > { %v463_v54 = vsel %vm456_vm11, %v459_v47, %v462_v49  ;;  %v536_v23 = vsel %vm1533_vm3, 0, %v1532_v28  ;;  %v551_v39 = vsub.s32 4, %v2125_v31  ;;  %vm880_vm5 = vcmp.lt.s32.totalorder %v2156_v27, 2 }
  0xe2   : > { %v464_v46 = vsel %vm453_vm12, nan, %v463_v54  ;;  %v889_v34 = vsel %vm881_vm15, %v872_v45, %v888_v56  ;;  %vm696_vm6 = vweird.f32 %v1928_v42  ;;  %v537_v59 = vsub.s32 32, %v536_v23 }
  0xe3   : > { %569 = vst [vmem:[#allocation2] sm:$0xff] %v464_v46  ;;  %v541_v61 = vsub.s32 4294967266, %v536_v23  ;;  %v883_v63 = vsel %vm879_vm13, %v863_v51, %v866_v32  ;;  %v891_v2 = vsel %vm879_vm13, %v869_v36, %v872_v45  ;;  %vm2200_vm7 = vcmp.le.f32.partialorder %v465_v40, 0.7853982  ;;  %v843_v51 = vpop.permute.xlu1 %842 }
  0xe4   : > { %v885_v12 = vsel %vm881_vm15, %v869_v36, %v884_v6  ;;  %v890_v17 = vsel %vm880_vm5, %v887_v55, %v889_v34  ;;  %v892_v18 = vsel %vm882_vm0, %v878_v53, 1326507024  ;;  %v1539_v1 = vadd.s32 4294967169, %v712_v52 }
  0xe5   : > { %v538_v9 = vshll.u32 %v2141_v11, %v536_v23  ;;  %v539_v50 = vshrl.u32 %v2135_v4, %v537_v59  ;;  %v542_v19 = vadd.s32 127, %v541_v61  ;;  %v893_v40 = vsel %vm881_vm15, %v875_v48, %v892_v18  ;;  %v1704_v20 = vpop.eup %1703 }
  0xe6   : > { %v894_v21 = vsel %vm880_vm5, %v891_v2, %v893_v40  ;;  %v2217_v22 = vmul.u32.u64.low %v2168_v29, %v890_v17  ;;  %v2218_v25 = vmul.u32.u64.high %v2168_v29, %v890_v17, %v2217_v22  ;;  %v718_v32 = vadd.s32 1, %v1539_v1  ;;  %v1706_v33 = vpop.eup %1705 }
  0xe7   : > { %v704_v43 = vxor.u32 2147483648, %v1704_v20  ;;  %v540_v8 = vor.u32 %v539_v50, %v538_v9  ;;  %v543_v11 = vshll.u32 %v542_v19, 23  ;;  %v2223_v4 = vand.u32 8388607, %v708_v13 }
  0xe8   : > { %v701_v58 = vxor.u32 2147483648, %v1706_v33  ;;  %v2226_v36 = vmul.u32.u64.low %v2168_v29, %v894_v21  ;;  %v2227_v45 = vmul.u32.u64.high %v2168_v29, %v894_v21, %v2226_v36  ;;  %vm719_vm8 = vcmp.gt.s32.totalorder %v718_v32, 0 }
  0xe9   : > { %v705_v35 = vsel %vm703_vm14, %v704_v43, %v1706_v33  ;;  %v544_v37 = vor.u32 4788187, %v543_v11  ;;  %v886_v26 = vsel %vm880_vm5, %v883_v63, %v885_v12  ;;  %v720_v30 = vsel %vm719_vm8, %v718_v32, 0 }
  0xea   : > { %v702_v38 = vsel %vm700_vm1, %v1704_v20, %v701_v58  ;;  %v552_v41 = vsel %vm467_vm2, %v551_v39, %v2125_v31  ;;  %v905_v48 = vadd.s32 1, %v2218_v25  ;;  %v722_v49 = vand.u32 31, %v720_v30 }
  0xeb   : > { %v706_v52 = vsel %vm699_vm4, %v702_v38, %v705_v35  ;;  %v545_v47 = vand.u32 2147483647, %v544_v37  ;;  %v547_v28 = vcvt.s32.f32 %v540_v8  ;;  %v2242_v27 = vadd.f32 %v843_v51, %v2138_v24 }
  0xec   : > { %v707_v53 = vsel %vm696_vm6, nan, %v706_v52  ;;  %v902_v54 = vmul.u32 %v2168_v29, %v886_v26  ;;  %vm904_vm9 = vc.u32 %v2227_v45, %v2217_v22  ;;  %v723_v31 = vsub.s32 32, %v722_v49 }
  0xed   : > { %812 = vst [vmem:[#allocation2 + $0xc] sm:$0xff] %v707_v53  ;;  %v548_v55 = vmul.f32 %v547_v28, %v545_v47  ;;  %v554_v60 = vsel %vm2200_vm7, 0, %v552_v41  ;;  %v906_v46 = vsel %vm904_vm9, %v905_v48, %v2218_v25  ;;  %v721_v6 = vshrl.u32 %v720_v30, 5 }
  0xee   : > { %v907_v56 = vadd.s32 %v906_v46, %v902_v54  ;;  %v725_v24 = vshll.u32 %v1748_v62, %v722_v49  ;;  %v726_v42 = vshrl.u32 %v1749_v0, %v723_v31  ;;  %v729_v23 = vshrl.u32 %v1750_v3, %v723_v31 }
  0xef   : > { %v549_v29 = vxor.u32 2147483648, %v548_v55  ;;  %v728_v39 = vshll.u32 %v1749_v0, %v722_v49  ;;  %v731_v34 = vshll.u32 %v1750_v3, %v722_v49  ;;  %v732_v59 = vshrl.u32 %v1751_v5, %v723_v31 }
  0xf0   : > { %v908_v61 = vadd.s32 536870912, %v907_v56  ;;  %v727_v63 = vor.u32 %v726_v42, %v725_v24  ;;  %v734_v2 = vshll.u32 %v1751_v5, %v722_v49  ;;  %v735_v12 = vshrl.u32 %v1752_v7, %v723_v31 }
  0xf1   : > { %v550_v17 = vsel %vm467_vm2, %v549_v29, %v548_v55  ;;  %v730_v18 = vor.u32 %v729_v23, %v728_v39  ;;  %v733_v1 = vor.u32 %v732_v59, %v731_v34  ;;  %v738_v9 = vshrl.u32 %v1753_v14, %v723_v31  ;;  %v1695_v55 = vld [vmem:[%s2447_s3] sm:$0xff]  }
  0xf2   : > { %v553_v50 = vsel %vm2200_vm7, %v1932_v44, %v550_v17  ;;  %v2266_v19 = vshrl.u32 %v908_v61, 30  ;;  %v736_v40 = vor.u32 %v735_v12, %v734_v2  ;;  %v737_v20 = vshll.u32 %v1752_v7, %v722_v49 }
  0xf3   : > { %1707 = vcosq.f32 %v553_v50  ;;  %v558_v21 = vadd.s32 3, %v554_v60  ;;  %v716_v25 = vor.u32 8388608, %v2223_v4  ;;  %vm740_vm10 = vcmp.lt.s32.totalorder %v721_v6, 1 }
  0xf4   : > { %1709 = vsinq.f32 %v553_v50  ;;  %v910_v32 = vshll.u32 %v2266_v19, 30  ;;  %v739_v33 = vor.u32 %v738_v9, %v737_v20  ;;  %vm743_vm11 = vcmp.lt.s32.totalorder %v721_v6, 4 }
  0xf5   : > { %v724_v43 = vshrl.u32 %v1748_v62, %v723_v31  ;;  %vm742_vm12 = vcmp.lt.s32.totalorder %v721_v6, 3  ;;  %v748_v10 = vsel %vm740_vm10, %v727_v63, %v730_v18  ;;  %v749_v8 = vsel %vm743_vm11, %v736_v40, 920167782 }
  0xf6   : > { %v2273_v11 = vsub.s32 %v907_v56, %v910_v32  ;;  %vm741_vm13 = vcmp.lt.s32.totalorder %v721_v6, 2  ;;  %v745_v58 = vsel %vm743_vm11, %v733_v1, 2102212464  ;;  %v750_v36 = vsel %vm742_vm12, %v733_v1, %v749_v8 }
  0xf7   : > { %v751_v35 = vsel %vm741_vm13, %v748_v10, %v750_v36  ;;  %v752_v4 = vsel %vm740_vm10, %v730_v18, %v733_v1  ;;  %v756_v37 = vshll.u32 %v716_v25, 8  ;;  %v559_v26 = vand.u32 3, %v558_v21 }
  0xf8   : > { %v913_v30 = vsub.s32 0, %v2273_v11  ;;  %v744_v38 = vsel %vm740_vm10, %v724_v43, %v727_v63  ;;  %v753_v41 = vsel %vm743_vm11, %v739_v33, 1326507024  ;;  %v746_v48 = vsel %vm742_vm12, %v730_v18, %v745_v58 }
  0xf9   : > { %v754_v49 = vsel %vm742_vm12, %v736_v40, %v753_v41  ;;  %v2279_v51 = vmul.u32.u64.low %v756_v37, %v751_v35  ;;  %v2280_v52 = vmul.u32.u64.high %v756_v37, %v751_v35, %v2279_v51  ;;  %v954_v53 = vand.u32 2139095040, %v2242_v27 }
  0xfa   : > { %v1545_v47 = vmin.u32 %v913_v30, %v2273_v11  ;;  %v755_v28 = vsel %vm741_vm13, %v752_v4, %v754_v49  ;;  %vm557_vm14 = vweird.f32 %v1932_v44  ;;  %vm849_vm15 = vcmp.lt.s32.totalorder %v2037_v16, 0 }
  0xfb   : > { %v2288_v54 = vmul.u32.u64.low %v756_v37, %v755_v28  ;;  %v2289_v31 = vmul.u32.u64.high %v756_v37, %v755_v28, %v2288_v54  ;;  %vm560_vm0 = vcmp.lt.s32.totalorder %v559_v26, 2  ;;  %vm561_vm1 = vcmp.eq.s32.totalorder %v559_v26, 0 }
  0xfc   : > { %v915_v60 = vclz %v1545_v47  ;;  %v747_v46 = vsel %vm741_vm13, %v744_v38, %v746_v48  ;;  %vm564_vm2 = vcmp.eq.s32.totalorder %v559_v26, 2  ;;  %v766_v24 = vadd.s32 1, %v2280_v52 }
  0xfd   : > { %v1708_v56 = vpop.eup %1707  ;;  %v955_v42 = vshrl.u32 %v954_v53, 23  ;;  %v933_v34 = vsub.s32 4, %v2266_v19  ;;  %v1754_v59 = vmov 0.0   ;;  %vm1103_vm3 = vcmask 326656  }
  0xfe   : > { %v1710_v23 = vpop.eup %1709  ;;  %v565_v29 = vxor.u32 2147483648, %v1708_v56  ;;  %v1546_v39 = vadd.s32 4294967294, %v915_v60  ;;  %327 = vst [vmem:[#allocation2 + $0x27] sm:$0x1] %v1754_v59  ;;  %v763_v63 = vmul.u32 %v756_v37, %v747_v46  ;;  %vm765_vm4 = vc.u32 %v2289_v31, %v2279_v51  ;;  %1592 = vmatprep.mubr.msk.bf16.mxu0 %vm1103_vm3, %v1695_v55 }
  0xff   : > { %v562_v61 = vxor.u32 2147483648, %v1710_v23  ;;  %v1548_v6 = vadd.s32 4294967169, %v955_v42  ;;  %v767_v12 = vsel %vm765_vm4, %v766_v24, %v2280_v52  ;;  %v951_v17 = vand.u32 2147483647, %v2242_v27 }
 0x100   : > { %v566_v2 = vsel %vm564_vm2, %v565_v29, %v1710_v23  ;;  %vm1547_vm5 = vcmp.lt.s32.totalorder %v1546_v39, 0  ;;  %v768_v9 = vadd.s32 %v767_v12, %v763_v63  ;;  %v903_v20 = vadd.s32 %v2217_v22, %v2227_v45 }
 0x101   : > { %v563_v18 = vsel %vm561_vm1, %v1708_v56, %v562_v61  ;;  %v918_v1 = vsel %vm1547_vm5, 0, %v1546_v39  ;;  %v961_v50 = vadd.s32 1, %v1548_v6  ;;  %v934_v33 = vsel %vm849_vm15, %v933_v34, %v2266_v19 }
 0x102   : > { %v567_v40 = vsel %vm560_vm0, %v563_v18, %v566_v2  ;;  %v919_v21 = vsub.s32 32, %v918_v1  ;;  %v923_v25 = vsub.s32 4294967266, %v918_v1  ;;  %v769_v43 = vadd.s32 536870912, %v768_v9 }
 0x103   : > { %v568_v32 = vsel %vm557_vm14, nan, %v567_v40  ;;  %vm962_vm6 = vcmp.gt.s32.totalorder %v961_v50, 0  ;;  %v920_v10 = vshll.u32 %v2273_v11, %v918_v1  ;;  %vm2316_vm7 = vcmp.le.f32.partialorder %v847_v15, 0.7853982 }
 0x104   : > { %570 = vst [vmem:[#allocation2 + $0x8] sm:$0xf] %v568_v32  ;;  %v921_v8 = vshrl.u32 %v903_v20, %v919_v21  ;;  %v924_v58 = vadd.s32 127, %v923_v25  ;;  %v963_v36 = vsel %vm962_vm6, %v961_v50, 0  ;;  %v2320_v44 = vshrl.u32 %v769_v43, 30 }
 0x105   : > { %v958_v45 = vand.u32 8388607, %v951_v17  ;;  %v965_v19 = vand.u32 31, %v963_v36  ;;  %v936_v11 = vsel %vm2316_vm7, 0, %v934_v33  ;;  %v964_v54 = vshrl.u32 %v963_v36, 5 }
 0x106   : > { %v922_v35 = vor.u32 %v921_v8, %v920_v10  ;;  %v925_v4 = vshll.u32 %v924_v58, 23  ;;  %v771_v37 = vshll.u32 %v2320_v44, 30  ;;  %v2327_v38 = vadd.s32 3, %v936_v11 }
 0x107   : > { %v966_v26 = vsub.s32 32, %v965_v19  ;;  %v959_v41 = vor.u32 8388608, %v958_v45  ;;  %v968_v55 = vshll.u32 %v1748_v62, %v965_v19  ;;  %v971_v60 = vshll.u32 %v1749_v0, %v965_v19 }
 0x108   : > { %v926_v30 = vor.u32 4788187, %v925_v4  ;;  %v2329_v15 = vsub.s32 %v768_v9, %v771_v37  ;;  %v929_v52 = vcvt.s32.f32 %v922_v35  ;;  %v974_v56 = vshll.u32 %v1750_v3, %v965_v19  ;;  %v1057_v37 = vld [vmem:[#allocation2] sm:$0xff] }
 0x109   : > { %v969_v48 = vshrl.u32 %v1749_v0, %v966_v26  ;;  %v972_v47 = vshrl.u32 %v1750_v3, %v966_v26  ;;  %v975_v28 = vshrl.u32 %v1751_v5, %v966_v26  ;;  %v977_v24 = vshll.u32 %v1751_v5, %v965_v19 }
 0x10a   : > { %v927_v49 = vand.u32 2147483647, %v926_v30  ;;  %v774_v53 = vsub.s32 0, %v2329_v15  ;;  %v978_v42 = vshrl.u32 %v1752_v7, %v966_v26  ;;  %v981_v34 = vshrl.u32 %v1753_v14, %v966_v26 }
 0x10b   : > { %v970_v29 = vor.u32 %v969_v48, %v968_v55  ;;  %v973_v39 = vor.u32 %v972_v47, %v971_v60  ;;  %v976_v63 = vor.u32 %v975_v28, %v974_v56  ;;  %v980_v2 = vshll.u32 %v1752_v7, %v965_v19  ;;  %v1058_v8 = vld [vmem:[#allocation2 + $0x8] sm:$0xff] }
 0x10c   : > { %v930_v46 = vmul.f32 %v929_v52, %v927_v49  ;;  %v1540_v23 = vmin.u32 %v774_v53, %v2329_v15  ;;  %v979_v6 = vor.u32 %v978_v42, %v977_v24  ;;  %v764_v0 = vadd.s32 %v2279_v51, %v2289_v31 }
 0x10d   : > { %v967_v3 = vshrl.u32 %v1748_v62, %v966_v26  ;;  %v999_v5 = vshll.u32 %v959_v41, 8  ;;  %v982_v1 = vor.u32 %v981_v34, %v980_v2  ;;  %vm983_vm8 = vcmp.lt.s32.totalorder %v964_v54, 1 }
 0x10e   : > { %v931_v61 = vxor.u32 2147483648, %v930_v46  ;;  %v776_v12 = vclz %v1540_v23  ;;  %vm984_vm9 = vcmp.lt.s32.totalorder %v964_v54, 2  ;;  %vm985_vm10 = vcmp.lt.s32.totalorder %v964_v54, 3 }
 0x10f   : > { %vm986_vm11 = vcmp.lt.s32.totalorder %v964_v54, 4  ;;  %v991_v51 = vsel %vm983_vm8, %v970_v29, %v973_v39  ;;  %v987_v62 = vsel %vm983_vm8, %v967_v3, %v970_v29  ;;  %v995_v21 = vsel %vm983_vm8, %v973_v39, %v976_v63 }
 0x110   : > { %v932_v18 = vsel %vm849_vm15, %v931_v61, %v930_v46  ;;  %v1541_v9 = vadd.s32 4294967294, %v776_v12  ;;  %v988_v7 = vsel %vm986_vm11, %v976_v63, 2102212464  ;;  %v992_v31 = vsel %vm986_vm11, %v979_v6, 920167782 }
 0x111   : > { %v935_v14 = vsel %vm2316_vm7, %v2037_v16, %v932_v18  ;;  %v993_v50 = vsel %vm985_vm10, %v976_v63, %v992_v31  ;;  %v996_v25 = vsel %vm986_vm11, %v982_v1, 1326507024  ;;  %v989_v43 = vsel %vm985_vm10, %v973_v39, %v988_v7 }
 0x112   : > { %1711 = vcosq.f32 %v935_v14  ;;  %vm1542_vm12 = vcmp.lt.s32.totalorder %v1541_v9, 0  ;;  %v994_v20 = vsel %vm984_vm9, %v991_v51, %v993_v50  ;;  %v997_v10 = vsel %vm985_vm10, %v979_v6, %v996_v25 }
 0x113   : > { %1713 = vsinq.f32 %v935_v14  ;;  %v779_v40 = vsel %vm1542_vm12, 0, %v1541_v9  ;;  %v998_v36 = vsel %vm984_vm9, %v995_v21, %v997_v10  ;;  %v990_v26 = vsel %vm984_vm9, %v987_v62, %v989_v43 }
 0x114   : > { %v780_v32 = vsub.s32 32, %v779_v40  ;;  %v784_v33 = vsub.s32 4294967266, %v779_v40  ;;  %v781_v58 = vshll.u32 %v2329_v15, %v779_v40  ;;  %v1062_v30 = vpack.c.bf16 %v1058_v8, %v1057_v37 }
 0x115   : > { %v2360_v22 = vmul.u32.u64.low %v999_v5, %v994_v20  ;;  %v2361_v45 = vmul.u32.u64.high %v999_v5, %v994_v20, %v2360_v22  ;;  %v2363_v4 = vmul.u32.u64.low %v999_v5, %v998_v36  ;;  %v2364_v11 = vmul.u32.u64.high %v999_v5, %v998_v36, %v2363_v4 }
 0x116   : > { %v782_v19 = vshrl.u32 %v764_v0, %v780_v32  ;;  %v785_v35 = vadd.s32 127, %v784_v33  ;;  %v941_v49 = vand.u32 3, %v2327_v38  ;;  %1586 = vmatprep.subr.bf16.mxu0 %v1062_v30  ;;  %v1006_v47 = vmul.u32 %v999_v5, %v990_v26 }
 0x117   : > { %v1009_v15 = vadd.s32 1, %v2361_v45  ;;  %vm1008_vm13 = vc.u32 %v2364_v11, %v2360_v22  ;;  %1587 = vmatpush3.bf16.msra.mxu0 %v1062_v30  ;;  %v794_v38 = vsub.s32 4, %v2320_v44  ;;  %vm939_vm0 = vweird.f32 %v2037_v16 }
 0x118   : > { %v783_v41 = vor.u32 %v782_v19, %v781_v58  ;;  %v786_v48 = vshll.u32 %v785_v35, 23  ;;  %vm946_vm14 = vcmp.eq.s32.totalorder %v941_v49, 2  ;;  %vm943_vm15 = vcmp.eq.s32.totalorder %v941_v49, 0 }
 0x119   : > { %v1010_v53 = vsel %vm1008_vm13, %v1009_v15, %v2361_v45  ;;  %vm942_vm1 = vcmp.lt.s32.totalorder %v941_v49, 2  ;;  %vm710_vm2 = vcmp.lt.s32.totalorder %v2127_v57, 0  ;;  %vm709_vm4 = vcmp.le.f32.partialorder %v708_v13, 0.7853982 }
 0x11a   : > { %v787_v52 = vor.u32 4788187, %v786_v48  ;;  %v790_v46 = vcvt.s32.f32 %v783_v41  ;;  %v1011_v56 = vadd.s32 %v1010_v53, %v1006_v47  ;;  %v795_v2 = vsel %vm710_vm2, %v794_v38, %v2320_v44 }
 0x11b   : > { %v797_v5 = vsel %vm709_vm4, 0, %v795_v2  ;;  %v1007_v40 = vadd.s32 %v2360_v22, %v2364_v11  ;;  %vm800_vm9 = vweird.f32 %v2127_v57  ;;  %vm953_vm10 = vcmp.lt.s32.totalorder %v2242_v27, 0 }
 0x11c   : > { %v1712_v28 = vpop.eup %1711  ;;  %v788_v54 = vand.u32 2147483647, %v787_v52  ;;  %v1012_v29 = vadd.s32 536870912, %v1011_v56  ;;  %v801_v1 = vadd.s32 3, %v797_v5  ;;  %vm952_vm11 = vcmp.le.f32.partialorder %v951_v17, 0.7853982 }
 0x11d   : > { %v1714_v55 = vpop.eup %1713  ;;  %v947_v60 = vxor.u32 2147483648, %v1712_v28 }
 0x11e   : > { %v944_v24 = vxor.u32 2147483648, %v1714_v55  ;;  %v791_v23 = vmul.f32 %v790_v46, %v788_v54  ;;  %v1013_v63 = vshrl.u32 %v1012_v29, 30  ;;  %v802_v7 = vand.u32 3, %v801_v1  ;;  %v1081_v29 = vpop.permute.xlu1 %1080 }
 0x11f   : > { %v948_v42 = vsel %vm946_vm14, %v947_v60, %v1714_v55 }
 0x120   : > { %v945_v39 = vsel %vm943_vm15, %v1712_v28, %v944_v24  ;;  %v792_v61 = vxor.u32 2147483648, %v791_v23  ;;  %v1014_v12 = vshll.u32 %v1013_v63, 30  ;;  %vm807_vm6 = vcmp.eq.s32.totalorder %v802_v7, 2 }
 0x121   : > { %v949_v34 = vsel %vm942_vm1, %v945_v39, %v948_v42  ;;  %vm803_vm7 = vcmp.lt.s32.totalorder %v802_v7, 2  ;;  %vm804_vm8 = vcmp.eq.s32.totalorder %v802_v7, 0  ;;  %v1037_v11 = vsub.s32 4, %v1013_v63  ;;  %v1696_v42 = vld [vmem:[%s2447_s3 + $0x8] sm:$0xff]  }
 0x122   : > { %v950_v6 = vsel %vm939_vm0, nan, %v949_v34  ;;  %v793_v0 = vsel %vm710_vm2, %v792_v61, %v791_v23  ;;  %v1015_v16 = vsub.s32 %v1011_v56, %v1014_v12  ;;  %vm1043_vm15 = vweird.f32 %v2242_v27  ;;  %v1697_v23 = vld [vmem:[%s2449_s5] sm:$0xff]  }
 0x123   : > { %v796_v3 = vsel %vm709_vm4, %v2127_v57, %v793_v0  ;;  %v1038_v57 = vsel %vm953_vm10, %v1037_v11, %v1013_v63  ;;  %vm1110_vm0 = vcmask 1043456   ;;  %vm1207_vm1 = vcmask 261120   ;;  %v1269_v11 = vld [vmem:[%s2451_s7 + $0x10] sm:$0xff] }
 0x124   : > { %1715 = vcosq.f32 %v796_v3  ;;  %v1017_v18 = vsub.s32 0, %v1015_v16  ;;  %v1040_v49 = vsel %vm952_vm11, 0, %v1038_v57 }
 0x125   : > { %1717 = vsinq.f32 %v796_v3  ;;  %v1044_v15 = vadd.s32 3, %v1040_v49 }
 0x126   : > { %v1549_v14 = vmin.u32 %v1017_v18, %v1015_v16 }
 0x127   : > { %v1045_v52 = vand.u32 3, %v1044_v15 }
 0x128   : > { %v1019_v9 = vclz %v1549_v14 }
 0x129   : > { %vm1050_vm12 = vcmp.eq.s32.totalorder %v1045_v52, 2  ;;  %vm1047_vm13 = vcmp.eq.s32.totalorder %v1045_v52, 0  ;;  %vm1046_vm14 = vcmp.lt.s32.totalorder %v1045_v52, 2 }
 0x12a   : > { %v1550_v51 = vadd.s32 4294967294, %v1019_v9 }
 0x12c   : > { %vm1551_vm5 = vcmp.lt.s32.totalorder %v1550_v51, 0 }
 0x12d   : > { %v1022_v13 = vsel %vm1551_vm5, 0, %v1550_v51  ;;  %v1698_v51 = vld [vmem:[%s2449_s5 + $0x8] sm:$0xff]  }
 0x12e   : > { %v1716_v31 = vpop.eup %1715  ;;  %v1023_v20 = vsub.s32 32, %v1022_v13  ;;  %v1027_v21 = vsub.s32 4294967266, %v1022_v13  ;;  %v1024_v33 = vshll.u32 %v1015_v16, %v1022_v13 }
 0x12f   : > { %v1718_v44 = vpop.eup %1717  ;;  %v808_v62 = vxor.u32 2147483648, %v1716_v31 }
 0x130   : > { %v805_v50 = vxor.u32 2147483648, %v1718_v44  ;;  %v1025_v43 = vshrl.u32 %v1007_v40, %v1023_v20  ;;  %v1028_v10 = vadd.s32 127, %v1027_v21 }
 0x131   : > { %v809_v25 = vsel %vm807_vm6, %v808_v62, %v1718_v44 }
 0x132   : > { %v806_v32 = vsel %vm804_vm8, %v1716_v31, %v805_v50  ;;  %v1026_v36 = vor.u32 %v1025_v43, %v1024_v33  ;;  %v1029_v45 = vshll.u32 %v1028_v10, 23  ;;  %v1755_v31 = vmov 0.0|0.0  }
 0x133   : > { %v810_v8 = vsel %vm803_vm7, %v806_v32, %v809_v25  ;;  %1627 = vmatprep.subr.bf16.mxu1 %v1755_v31 }
 0x134   : > { %v811_v58 = vsel %vm800_vm9, nan, %v810_v8  ;;  %v1030_v19 = vor.u32 4788187, %v1029_v45  ;;  %v1033_v4 = vcvt.s32.f32 %v1026_v36 }
 0x135   : > { %813 = vst [vmem:[#allocation2 + $0x14] sm:$0xf] %v811_v58 }
 0x136   : > { %v1031_v35 = vand.u32 2147483647, %v1030_v19 }
 0x138   : > { %v1034_v22 = vmul.f32 %v1033_v4, %v1031_v35  ;;  %v1267_v4 = vld [vmem:[%s2451_s7] sm:$0xff] }
 0x13a   : > { %v1035_v37 = vxor.u32 2147483648, %v1034_v22 }
 0x13c   : > { %v1059_v26 = vld [vmem:[#allocation2 + $0x10] sm:$0xff]  ;;  %v1036_v41 = vsel %vm953_vm10, %v1035_v37, %v1034_v22  ;;  %v1268_v22 = vld [vmem:[%s2451_s7 + $0x8] sm:$0xff]  ;;  %v1270_v37 = vld [vmem:[%s2451_s7 + $0x18] sm:$0xff] }
 0x13d   : > { %v1063_v30 = vpack.c.bf16 %v950_v6, %v1059_v26  ;;  %v1039_v48 = vsel %vm952_vm11, %v2242_v27, %v1036_v41  ;;  %v1076_v27 = vpop.permute.xlu0 %1075  ;;  %v1091_v6 = vpop.permute.xlu1 %1090  ;;  %v1271_v26 = vld [vmem:[%s2451_s7 + $0x20] sm:$0x1] }
 0x13e   : > { %1719 = vcosq.f32 %v1039_v48 }
 0x13f   : > { %1588 = vmatprep.subr.bf16.mxu0 %v1063_v30  ;;  %1721 = vsinq.f32 %v1039_v48 }
 0x140   : > { %1589 = vmatpush3.bf16.msra.mxu0 %v1063_v30 }
 0x141   : > { %v1086_v39 = vpop.permute.xlu0 %1085  ;;  %v1185_v62 = vpop.permute.xlu1 %1184 }
 0x145   : > { %v1180_v44 = vpop.permute.xlu0 %1179  ;;  %v1195_v21 = vpop.permute.xlu1 %1194 }
 0x148   : > { %v1720_v47 = vpop.eup %1719 }
 0x149   : > { %v1722_v28 = vpop.eup %1721  ;;  %v1051_v53 = vxor.u32 2147483648, %v1720_v47  ;;  %v1190_v13 = vpop.permute.xlu0 %1189 }
 0x14a   : > { %v1048_v55 = vxor.u32 2147483648, %v1722_v28  ;;  %v1285_v49 = vpop.permute.xlu1 %1284 }
 0x14b   : > { %v1052_v60 = vsel %vm1050_vm12, %v1051_v53, %v1722_v28 }
 0x14c   : > { %v1049_v17 = vsel %vm1047_vm13, %v1720_v47, %v1048_v55 }
 0x14d   : > { %v1053_v54 = vsel %vm1046_vm14, %v1049_v17, %v1052_v60  ;;  %v1280_v30 = vpop.permute.xlu0 %1279 }
 0x14e   : > { %v1054_v46 = vsel %vm1043_vm15, nan, %v1053_v54  ;;  %v1295_v60 = vpop.permute.xlu1 %1294 }
 0x14f   : > { %1056 = vst [vmem:[#allocation2 + $0x20] sm:$0xf] %v1054_v46 }
 0x156   : > { %v1061_v56 = vld [vmem:[#allocation2 + $0x20] sm:$0xff] }
 0x157   : > { %v1064_v24 = vpack.c.bf16 %v1061_v56, %v1061_v56 }
 0x159   : > { %1633 = vmatprep.subr.msk.bf16.mxu0 %vm1110_vm0, %v1064_v24  ;;  %v1112_v38 = vsel %vm1110_vm0, %v1064_v24, 0 }
 0x15a   : > { %1591 = vmatpush3.bf16.msra.mxu0 %v1112_v38 }
 0x15d   : > { %1593 = vmatmul.mubr.msk.bf16.vlgmr.msra.gmra.mrb[0].mxu0 %vm1103_vm3, %v1696_v42  ;;  %vm1756_vm3 = vmmov 0  }
 0x15e   : > { %1600 = vmatprep.mubr.msk.bf16.mxu0 %vm1207_vm1, %v1697_v23  ;;  %1612 = vmatprep.mubr.msk.f32.mxu1 %vm1756_vm3, %v1754_v59 }
 0x230   : > { %v1594_v34 = vpop.f32.mrb[0].mxu0 }
 0x231   : > { %v1157_v61 = vadd.f32 %v1594_v34, %v1086_v39  ;;  %v1148_v63 = vpop.f32.mrb[1].mxu0 }
 0x232   : > { %v1149_v2 = vadd.f32 %v1148_v63, %v1076_v27  ;;  %v1595_v0 = vpop.f32.mrb[2].mxu0 }
 0x233   : > { %v1160_v12 = vadd.f32 %v1595_v0, %v1091_v6  ;;  %v1151_v3 = vpop.f32.mrb[3].mxu0  ;;  %v1165_v16 = vmax.f32 %v1157_v61, 0.0 }
 0x234   : > { %v1152_v5 = vadd.f32 %v1151_v3, %v1081_v29  ;;  %v1163_v1 = vmax.f32 %v1149_v2, 0.0 }
 0x235   : > { %v1166_v18 = vmax.f32 %v1160_v12, 0.0 }
 0x236   : > { %v1164_v14 = vmax.f32 %v1152_v5, 0.0 }
 0x237   : > { %v1172_v9 = vpack.c.bf16 %v1166_v18, %v1165_v16 }
 0x238   : > { %v1171_v7 = vpack.c.bf16 %v1164_v14, %v1163_v1 }
 0x23a   : > { %1596 = vmatprep.subr.bf16.mxu0 %v1171_v7 }
 0x23b   : > { %1597 = vmatpush3.bf16.msra.mxu0 %v1171_v7 }
 0x23c   : > { %1598 = vmatprep.subr.bf16.mxu0 %v1172_v9 }
 0x23f   : > { %1599 = vmatpush3.bf16.msra.mxu0 %v1172_v9 }
 0x242   : > { %1601 = vmatmul.mubr.msk.bf16.vlgmr.msra.gmra.mrb[4].mxu0 %vm1207_vm1, %v1698_v51 }
 0x315   : > { %v1602_v50 = vpop.f32.mrb[4].mxu0 }
 0x316   : > { %v1257_v40 = vadd.f32 %v1602_v50, %v1190_v13  ;;  %v1248_v20 = vpop.f32.mrb[5].mxu0 }
 0x317   : > { %v1249_v25 = vadd.f32 %v1248_v20, %v1180_v44  ;;  %v1603_v32 = vpop.f32.mrb[6].mxu0 }
 0x318   : > { %v1260_v33 = vadd.f32 %v1603_v32, %v1195_v21  ;;  %v1251_v43 = vpop.f32.mrb[7].mxu0  ;;  %v1265_v8 = vmax.f32 %v1257_v40, 0.0 }
 0x319   : > { %v1252_v10 = vadd.f32 %v1251_v43, %v1185_v62  ;;  %v1263_v36 = vmax.f32 %v1249_v25, 0.0 }
 0x31a   : > { %v1266_v58 = vmax.f32 %v1260_v33, 0.0 }
 0x31b   : > { %v1264_v45 = vmax.f32 %v1252_v10, 0.0 }
 0x31c   : > { %v1631_v19 = vpack.c.bf16 %v1266_v58, %v1265_v8 }
 0x31d   : > { %v1628_v35 = vpack.c.bf16 %v1264_v45, %v1263_v36 }
 0x31f   : > { %1629 = vmatpush3.bf16.msra.mxu1 %v1628_v35 }
 0x320   : > { %1630 = vmatprep.subr.bf16.mxu1 %v1755_v31 }
 0x323   : > { %1632 = vmatpush3.bf16.msra.mxu1 %v1631_v19 }
 0x326   : > { %1613 = vmatmul.mubr.msk.f32.vlgmr.msra.gmra.mrb[0].mxu1 %vm1207_vm1, %v1267_v4 }
 0x327   : > { %1615 = vmatprep.mubr.msk.f32.mxu1 %vm1756_vm3, %v1754_v59 }
 0x32a   : > { %1616 = vmatmul.mubr.msk.f32.gmra.mrb[2].mxu1 %vm1207_vm1, %v1268_v22 }
 0x32b   : > { %1618 = vmatprep.mubr.msk.f32.mxu1 %vm1756_vm3, %v1754_v59 }
 0x32e   : > { %1619 = vmatmul.mubr.msk.f32.gmra.mrb[4].mxu1 %vm1207_vm1, %v1269_v11 }
 0x32f   : > { %1621 = vmatprep.mubr.msk.f32.mxu1 %vm1756_vm3, %v1754_v59 }
 0x332   : > { %1622 = vmatmul.mubr.msk.f32.gmra.mrb[6].mxu1 %vm1207_vm1, %v1270_v37 }
 0x333   : > { %1624 = vmatprep.mubr.msk.f32.mxu1 %vm1756_vm3, %v1754_v59  ;;  %v1290_v59 = vpop.permute.xlu0 %1289 }
 0x336   : > { %1625 = vmatmul.mubr.msk.f32.gmra.mrb[8].mxu1 %vm1207_vm1, %v1271_v26 }
 0x337   : > { %v1300_v56 = vpop.permute.xlu0 %1299 }
 0x3f9   : > { %v1383_v41 = vpop.f32.mrb[0].mxu1 }
 0x3fa   : > { %v1384_v57 = vadd.f32 %v1383_v41, %v1280_v30  ;;  %v1614_v48 = vpop.f32.mrb[1].mxu1 }
 0x3fc   : > { %1407 = vst [vmem:[%s319_s20] sm:$0xff] %v1384_v57 }
 0x3fd   : > { %v1388_v15 = vpop.f32.mrb[2].mxu1 }
 0x3fe   : > { %v1389_v52 = vadd.f32 %v1388_v15, %v1285_v49  ;;  %v1617_v47 = vpop.f32.mrb[3].mxu1 }
 0x400   : > { %1408 = vst [vmem:[%s319_s20 + $0x8] sm:$0xff] %v1389_v52 }
 0x401   : > { %v1393_v28 = vpop.f32.mrb[4].mxu1 }
 0x402   : > { %v1394_v53 = vadd.f32 %v1393_v28, %v1290_v59  ;;  %v1620_v55 = vpop.f32.mrb[5].mxu1 }
 0x403   : > { %v1456_v23 = vld [vmem:[%s319_s20] sm:$0xff] (%p1832_p4) }
 0x404   : > { %1409 = vst [vmem:[%s319_s20 + $0x10] sm:$0xff] %v1394_v53  ;;  %1457 = vst [vmem:[%s1420_s23] sm:$0xff] (%p1832_p4), %v1456_v23 }
 0x405   : > { %v1398_v17 = vpop.f32.mrb[6].mxu1 }
 0x406   : > { %v1399_v54 = vadd.f32 %v1398_v17, %v1295_v60  ;;  %v1623_v46 = vpop.f32.mrb[7].mxu1  ;;  %1418 = sbr.rel (!%p1832_p4) target bundleno = 1045 (0x415), region = 60 }
 0x407   : > { %v1458_v27 = vld [vmem:[%s319_s20 + $0x8] sm:$0xff] (%p1832_p4) }
 0x408   : > { %1410 = vst [vmem:[%s319_s20 + $0x18] sm:$0xff] %v1399_v54  ;;  %1459 = vst [vmem:[%s1420_s23 + $0x10] sm:$0xff] (%p1832_p4), %v1458_v27 }
 0x409   : > { %v1403_v24 = vpop.f32.mrb[8].mxu1 }
 0x40a   : > { %v1404_v38 = vadd.f32 %v1403_v24, %v1300_v56  ;;  %v1626_v42 = vpop.f32.mrb[9].mxu1 }
 0x40b   : > { %v1460_v29 = vld [vmem:[%s319_s20 + $0x10] sm:$0xff] (%p1832_p4) }
 0x40c   : > { %1411 = vst [vmem:[%s319_s20 + $0x20] sm:$0x1] %v1404_v38  ;;  %1461 = vst [vmem:[%s1420_s23 + $0x20] sm:$0xff] (%p1832_p4), %v1460_v29 }
 0x40f   : > { %v1462_v39 = vld [vmem:[%s319_s20 + $0x18] sm:$0xff] }
 0x410   : > { %1463 = vst [vmem:[%s1420_s23 + $0x30] sm:$0xff] %v1462_v39 }
 0x413   : > { %v1464_v34 = vld [vmem:[%s319_s20 + $0x20] sm:$0xff] }
 0x414   : > { %1465 = vst [vmem:[%s1420_s23 + $0x40] sm:$0xff] %v1464_v34 }
 0x415 PF: > { %p16_p8 = scmp.ge.s32.totalorder %s1822_s13, 4   ;;  %s2463_s30 = smov %s1741_s10 }
 0x416   : > { %s2464_s10 = smov %s1830_s16  ;;  %s2465_s11 = smov %s1822_s13 }
 0x417   :  { %18 = sbr.rel (!%p16_p8) target bundleno = 2 (0x2), region = 124 }

</bundles_post_ra>
